<compile_context>
chip_gen: v7x
topology: tpu7x:2x2x1
jax: 0.10.0
libtpu: 0.0.40
codegen_flags: <defaults>
</compile_context>

<pallas_src>
import functools

import numpy as np
import jax
import jax.numpy as jnp
from jax.experimental import pallas as pl
from jax.experimental.pallas import tpu as pltpu

HEADW = 128  # lane-tile width; mu occupies lanes [0,128), log_sigma [128,256)


def _round_up(x, m):
    return ((x + m - 1) // m) * m


def _cdiv(a, b):
    return (a + b - 1) // b


# ----------------------------------------------------------------------------
# Deterministic parameter initialization (mirrors nn.Linear / orthogonal_init).
# Weights are stored pre-transposed as (in_features, out_features) so the
# kernel computes y = x @ W + b  (== PyTorch's x @ W.T + b with W = (out, in)).
# ----------------------------------------------------------------------------
def orthogonal_(key, out_features, in_features, gain):
    """Mimic torch.nn.init.orthogonal_ for a 2D weight (out, in)."""
    rows, cols = out_features, in_features
    flat = jax.random.normal(key, (rows, cols), dtype=jnp.float32)
    transposed = rows < cols
    if transposed:
        flat = flat.T
    q, r = jnp.linalg.qr(flat)
    d = jnp.sign(jnp.diagonal(r))
    q = q * d[None, :]
    if transposed:
        q = q.T
    return gain * q  # (out, in)


def make_actor_params(key, state_dim, hidden_sizes, action_dim):
    keys = jax.random.split(key, 8)
    gain_net = float(np.sqrt(2.0))
    gain_mu = float(np.sqrt(2.0) * 0.01)

    h0, h1 = hidden_sizes
    w1 = orthogonal_(keys[0], h0, state_dim, gain_net).T          # (state_dim, h0)
    b1 = jnp.zeros((1, h0), jnp.float32)
    w2 = orthogonal_(keys[1], h1, h0, gain_net).T                  # (h0, h1)
    b2 = jnp.zeros((1, h1), jnp.float32)

    wmu = orthogonal_(keys[2], action_dim, h1, gain_mu).T          # (h1, action_dim)
    bmu = jnp.zeros((1, action_dim), jnp.float32)

    # sigma head (conditioned_sigma=True): nn.Linear default init,
    # uniform +-1/sqrt(fan_in).
    bound = 1.0 / np.sqrt(h1)
    wsig = jax.random.uniform(keys[3], (h1, action_dim), jnp.float32,
                              minval=-bound, maxval=bound)         # (h1, action_dim)
    bsig = jax.random.uniform(keys[4], (1, action_dim), jnp.float32,
                              minval=-bound, maxval=bound)
    return dict(w1=w1, b1=b1, w2=w2, b2=b2,
                wmu=wmu, bmu=bmu, wsig=wsig, bsig=bsig)


def fuse_head_params(params, action_dim, headw=HEADW):
    """mu columns -> lanes [0, headw); log_sigma columns -> lanes [headw, 2*headw).

    Splitting at the 128-lane tile boundary makes both in-kernel slices start at
    lane 0 of a vreg (no lane shifts / relayouts).
    """
    assert action_dim <= headw, "action_dim must fit in one 128-lane tile"
    h1 = params["wmu"].shape[0]
    wh = jnp.zeros((h1, 2 * headw), jnp.float32)
    wh = wh.at[:, :action_dim].set(params["wmu"])
    wh = wh.at[:, headw:headw + action_dim].set(params["wsig"])
    bh = jnp.zeros((1, 2 * headw), jnp.float32)
    bh = bh.at[:, :action_dim].set(params["bmu"])
    bh = bh.at[:, headw:headw + action_dim].set(params["bsig"])
    return wh, bh


# ----------------------------------------------------------------------------
# Pallas kernel: fused MLP -> fused (mu | log_sigma) head -> rsample -> tanh
# ----------------------------------------------------------------------------
def actor_kernel(state_ref, eps_ref, w1_ref, b1_ref, w2_ref, b2_ref,
                 wh_ref, bh_ref, out_ref, *, action_dim):
    a = action_dim
    x = state_ref[...]                                             # (TB, S)

    # hidden layer 1 + ReLU (f32 accumulate regardless of input dtype)
    h = jnp.dot(x, w1_ref[...], preferred_element_type=jnp.float32) + b1_ref[...]
    h = jnp.maximum(h, 0.0)

    # hidden layer 2 + ReLU
    h = jnp.dot(h.astype(w2_ref.dtype), w2_ref[...],
                preferred_element_type=jnp.float32) + b2_ref[...]
    h = jnp.maximum(h, 0.0)

    # Fused head, split on the 128-lane tile boundary:
    #   lanes [0, A)            = mu
    #   lanes [128, 128 + A)    = log_sigma
    head = jnp.dot(h.astype(wh_ref.dtype), wh_ref[...],
                   preferred_element_type=jnp.float32) + bh_ref[...]

    mu = head[:, :a]                                               # (TB, A), lane 0
    log_sigma = head[:, HEADW:HEADW + a]                           # (TB, A), lane 0
    sigma = jnp.exp(jnp.clip(log_sigma, -20.0, 2.0))

    # Reparameterized sample (Normal(mu, sigma).rsample()) then tanh,
    # written straight to the (TB, A) output block — no padding, no concat.
    out_ref[...] = jnp.tanh(mu + sigma * eps_ref[...])


def _choose_batch_tile(B, tile_b_max):
    """Big tiles (amortize ~0.35us/step) but keep >= 2 grid steps so v7x's two
    TensorCores both get work; rows are a multiple of 8 (or == B for tiny B)."""
    if B <= 16:
        return B
    tile = min(tile_b_max, _round_up(_cdiv(B, 2), 8))
    return max(8, tile)


def actor_forward(state, params, eps, *, tile_b_max=2048,
                  compute_dtype=jnp.float32):
    B, state_dim = state.shape
    action_dim = params["wmu"].shape[1]
    h0 = params["w1"].shape[1]
    h1 = params["w2"].shape[1]

    wh, bh = fuse_head_params(params, action_dim)

    # Optional bf16 streaming of state + weights (biases / accumulate stay f32).
    state_c = state.astype(compute_dtype)
    w1 = params["w1"].astype(compute_dtype)
    w2 = params["w2"].astype(compute_dtype)
    wh = wh.astype(compute_dtype)

    tile_b = _choose_batch_tile(B, tile_b_max)
    n_tiles = _cdiv(B, tile_b)  # ragged last tile handled by Pallas boundary
                                # masking; no wrapper-side jnp.pad copy.

    vmem = pltpu.MemorySpace.VMEM
    out = pl.pallas_call(
        functools.partial(actor_kernel, action_dim=action_dim),
        out_shape=jax.ShapeDtypeStruct((B, action_dim), jnp.float32),
        grid=(n_tiles,),
        in_specs=[
            # streamed per batch tile (double-buffered by the pipeline)
            pl.BlockSpec((tile_b, state_dim), lambda i: (i, 0), memory_space=vmem),
            pl.BlockSpec((tile_b, action_dim), lambda i: (i, 0), memory_space=vmem),
            # weights / biases: constant index maps -> stay VMEM-resident
            pl.BlockSpec((state_dim, h0), lambda i: (0, 0), memory_space=vmem),
            pl.BlockSpec((1, h0), lambda i: (0, 0), memory_space=vmem),
            pl.BlockSpec((h0, h1), lambda i: (0, 0), memory_space=vmem),
            pl.BlockSpec((1, h1), lambda i: (0, 0), memory_space=vmem),
            pl.BlockSpec((h1, 2 * HEADW), lambda i: (0, 0), memory_space=vmem),
            pl.BlockSpec((1, 2 * HEADW), lambda i: (0, 0), memory_space=vmem),
        ],
        out_specs=pl.BlockSpec((tile_b, action_dim), lambda i: (i, 0),
                               memory_space=vmem),
        compiler_params=pltpu.CompilerParams(
            dimension_semantics=("parallel",),   # v7x: shard batch over 2 TCs
        ),
    )(state_c, eps, w1, params["b1"], w2, params["b2"], wh, bh)

    return out


# ----------------------------------------------------------------------------
# Pure-JAX reference for sanity checking
# ----------------------------------------------------------------------------
def actor_forward_ref(state, params, eps):
    h = jnp.maximum(state @ params["w1"] + params["b1"], 0.0)
    h = jnp.maximum(h @ params["w2"] + params["b2"], 0.0)
    mu = h @ params["wmu"] + params["bmu"]
    log_sigma = h @ params["wsig"] + params["bsig"]
    sigma = jnp.exp(jnp.clip(log_sigma, -20.0, 2.0))
    return jnp.tanh(mu + sigma * eps)


if __name__ == "__main__":
    # Shapes consistent with the module; batch large enough to exercise a
    # 2-step parallel batch grid while the data stays tiny.
    batch = 512
    state_dim = 16
    hidden_sizes = [32, 32]
    action_dim = 4

    key = jax.random.PRNGKey(0)
    k_params, k_state, k_eps = jax.random.split(key, 3)

    params = make_actor_params(k_params, state_dim, hidden_sizes, action_dim)
    state = jax.random.normal(k_state, (batch, state_dim), dtype=jnp.float32)
    eps = jax.random.normal(k_eps, (batch, action_dim), dtype=jnp.float32)

    # Even batch: tile_b = 256, grid = (2,)
    action = jax.block_until_ready(actor_forward(state, params, eps))
    ref = actor_forward_ref(state, params, eps)
    np.testing.assert_allclose(np.asarray(action), np.asarray(ref),
                               rtol=1e-5, atol=1e-5)
    assert action.shape == (batch, action_dim)

    # Ragged batch: no wrapper-side pad; last grid tile is partially OOB and
    # the out-of-range rows are masked on writeback.
    b2 = 300
    action2 = jax.block_until_ready(
        actor_forward(state[:b2], params, eps[:b2]))
    ref2 = actor_forward_ref(state[:b2], params, eps[:b2])
    np.testing.assert_allclose(np.asarray(action2), np.asarray(ref2),
                               rtol=1e-5, atol=1e-5)
    assert action2.shape == (b2, action_dim)

    print("KERNEL_OK")
</pallas_src>

<mosaic_0001>
module attributes {stable_mosaic.version = 11 : i64} {
  func.func @actor_kernel(%arg0: i32, %arg1: memref<256x16xf32, #tpu.memory_space<vmem>>, %arg2: memref<256x4xf32, #tpu.memory_space<vmem>>, %arg3: memref<16x32xf32, #tpu.memory_space<vmem>>, %arg4: memref<1x32xf32, #tpu.memory_space<vmem>>, %arg5: memref<32x32xf32, #tpu.memory_space<vmem>>, %arg6: memref<1x32xf32, #tpu.memory_space<vmem>>, %arg7: memref<32x256xf32, #tpu.memory_space<vmem>>, %arg8: memref<1x256xf32, #tpu.memory_space<vmem>>, %arg9: memref<256x4xf32, #tpu.memory_space<vmem>>) attributes {dimension_semantics = [#tpu.dimension_semantics<parallel>], iteration_bounds = array<i64: 2>, scalar_prefetch = 0 : i64, scratch_operands = 0 : i64, tpu.core_type = #tpu.core_type<tc>, window_params = [{transform_indices = @transform_0, window_bounds = array<i64: 256, 16>}, {transform_indices = @transform_1, window_bounds = array<i64: 256, 4>}, {pipeline_mode = #tpu.pipeline_mode<synchronous>, transform_indices = @transform_2, window_bounds = array<i64: 16, 32>}, {pipeline_mode = #tpu.pipeline_mode<synchronous>, transform_indices = @transform_3, window_bounds = array<i64: 1, 32>}, {pipeline_mode = #tpu.pipeline_mode<synchronous>, transform_indices = @transform_4, window_bounds = array<i64: 32, 32>}, {pipeline_mode = #tpu.pipeline_mode<synchronous>, transform_indices = @transform_5, window_bounds = array<i64: 1, 32>}, {pipeline_mode = #tpu.pipeline_mode<synchronous>, transform_indices = @transform_6, window_bounds = array<i64: 32, 256>}, {pipeline_mode = #tpu.pipeline_mode<synchronous>, transform_indices = @transform_7, window_bounds = array<i64: 1, 256>}, {transform_indices = @transform_8, window_bounds = array<i64: 256, 4>}]} {
    %c0 = arith.constant 0 : index
    %c0_0 = arith.constant 0 : index
    %0 = vector.load %arg1[%c0, %c0_0] : memref<256x16xf32, #tpu.memory_space<vmem>>, vector<256x16xf32>
    %c0_1 = arith.constant 0 : index
    %c0_2 = arith.constant 0 : index
    %1 = vector.load %arg3[%c0_1, %c0_2] : memref<16x32xf32, #tpu.memory_space<vmem>>, vector<16x32xf32>
    %cst = arith.constant dense<0.000000e+00> : vector<256x32xf32>
    %2 = tpu.matmul %0, %1, %cst {dimension_numbers = #tpu.dot_dimension_numbers<[1], [0], [0], [1], [0, 0, 1, 1], [], []>} : vector<256x16xf32>, vector<16x32xf32>, vector<256x32xf32> -> vector<256x32xf32>
    %c0_3 = arith.constant 0 : index
    %c0_4 = arith.constant 0 : index
    %3 = vector.load %arg4[%c0_3, %c0_4] : memref<1x32xf32, #tpu.memory_space<vmem>>, vector<1x32xf32>
    %4 = vector.broadcast %3 : vector<1x32xf32> to vector<256x32xf32>
    %5 = arith.addf %2, %4 : vector<256x32xf32>
    %cst_5 = arith.constant 0.000000e+00 : f32
    %6 = vector.broadcast %cst_5 : f32 to vector<256x32xf32>
    %7 = arith.maximumf %5, %6 : vector<256x32xf32>
    %c0_6 = arith.constant 0 : index
    %c0_7 = arith.constant 0 : index
    %8 = vector.load %arg5[%c0_6, %c0_7] : memref<32x32xf32, #tpu.memory_space<vmem>>, vector<32x32xf32>
    %cst_8 = arith.constant dense<0.000000e+00> : vector<256x32xf32>
    %9 = tpu.matmul %7, %8, %cst_8 {dimension_numbers = #tpu.dot_dimension_numbers<[1], [0], [0], [1], [0, 0, 1, 1], [], []>} : vector<256x32xf32>, vector<32x32xf32>, vector<256x32xf32> -> vector<256x32xf32>
    %c0_9 = arith.constant 0 : index
    %c0_10 = arith.constant 0 : index
    %10 = vector.load %arg6[%c0_9, %c0_10] : memref<1x32xf32, #tpu.memory_space<vmem>>, vector<1x32xf32>
    %11 = vector.broadcast %10 : vector<1x32xf32> to vector<256x32xf32>
    %12 = arith.addf %9, %11 : vector<256x32xf32>
    %cst_11 = arith.constant 0.000000e+00 : f32
    %13 = vector.broadcast %cst_11 : f32 to vector<256x32xf32>
    %14 = arith.maximumf %12, %13 : vector<256x32xf32>
    %c0_12 = arith.constant 0 : index
    %c0_13 = arith.constant 0 : index
    %15 = vector.load %arg7[%c0_12, %c0_13] : memref<32x256xf32, #tpu.memory_space<vmem>>, vector<32x256xf32>
    %cst_14 = arith.constant dense<0.000000e+00> : vector<256x256xf32>
    %16 = tpu.matmul %14, %15, %cst_14 {dimension_numbers = #tpu.dot_dimension_numbers<[1], [0], [0], [1], [0, 0, 1, 1], [], []>} : vector<256x32xf32>, vector<32x256xf32>, vector<256x256xf32> -> vector<256x256xf32>
    %c0_15 = arith.constant 0 : index
    %c0_16 = arith.constant 0 : index
    %17 = vector.load %arg8[%c0_15, %c0_16] : memref<1x256xf32, #tpu.memory_space<vmem>>, vector<1x256xf32>
    %18 = vector.broadcast %17 : vector<1x256xf32> to vector<256x256xf32>
    %19 = arith.addf %16, %18 : vector<256x256xf32>
    %20 = vector.extract_strided_slice %19 {offsets = [0, 0], sizes = [256, 4], strides = [1, 1]} : vector<256x256xf32> to vector<256x4xf32>
    %21 = vector.extract_strided_slice %19 {offsets = [0, 128], sizes = [256, 4], strides = [1, 1]} : vector<256x256xf32> to vector<256x4xf32>
    %cst_17 = arith.constant -2.000000e+01 : f32
    %cst_18 = arith.constant 2.000000e+00 : f32
    %22 = vector.broadcast %cst_17 : f32 to vector<256x4xf32>
    %23 = arith.maximumf %22, %21 : vector<256x4xf32>
    %24 = vector.broadcast %cst_18 : f32 to vector<256x4xf32>
    %25 = arith.minimumf %24, %23 : vector<256x4xf32>
    %26 = math.exp %25 : vector<256x4xf32>
    %c0_19 = arith.constant 0 : index
    %c0_20 = arith.constant 0 : index
    %27 = vector.load %arg2[%c0_19, %c0_20] : memref<256x4xf32, #tpu.memory_space<vmem>>, vector<256x4xf32>
    %28 = arith.mulf %26, %27 : vector<256x4xf32>
    %29 = arith.addf %20, %28 : vector<256x4xf32>
    %30 = math.tanh %29 : vector<256x4xf32>
    %c0_21 = arith.constant 0 : index
    %c0_22 = arith.constant 0 : index
    %31 = vector.load %arg9[%c0_21, %c0_22] : memref<256x4xf32, #tpu.memory_space<vmem>>, vector<256x4xf32>
    tpu.vector_store %arg9[%c0_21, %c0_22], %30 {strides = array<i32>} : memref<256x4xf32, #tpu.memory_space<vmem>>, vector<256x4xf32>,
    return
  }
  func.func @transform_0(%arg0: i32) -> (i32, i32) {
    %c0_i32 = arith.constant 0 : i32
    %c0_i32_0 = arith.constant 0 : i32
    return %arg0, %c0_i32 : i32, i32
  }
  func.func @transform_1(%arg0: i32) -> (i32, i32) {
    %c0_i32 = arith.constant 0 : i32
    %c0_i32_0 = arith.constant 0 : i32
    return %arg0, %c0_i32 : i32, i32
  }
  func.func @transform_2(%arg0: i32) -> (i32, i32) {
    %c0_i32 = arith.constant 0 : i32
    %c0_i32_0 = arith.constant 0 : i32
    %c0_i32_1 = arith.constant 0 : i32
    return %c0_i32, %c0_i32_0 : i32, i32
  }
  func.func @transform_3(%arg0: i32) -> (i32, i32) {
    %c0_i32 = arith.constant 0 : i32
    %c0_i32_0 = arith.constant 0 : i32
    %c0_i32_1 = arith.constant 0 : i32
    return %c0_i32, %c0_i32_0 : i32, i32
  }
  func.func @transform_4(%arg0: i32) -> (i32, i32) {
    %c0_i32 = arith.constant 0 : i32
    %c0_i32_0 = arith.constant 0 : i32
    %c0_i32_1 = arith.constant 0 : i32
    return %c0_i32, %c0_i32_0 : i32, i32
  }
  func.func @transform_5(%arg0: i32) -> (i32, i32) {
    %c0_i32 = arith.constant 0 : i32
    %c0_i32_0 = arith.constant 0 : i32
    %c0_i32_1 = arith.constant 0 : i32
    return %c0_i32, %c0_i32_0 : i32, i32
  }
  func.func @transform_6(%arg0: i32) -> (i32, i32) {
    %c0_i32 = arith.constant 0 : i32
    %c0_i32_0 = arith.constant 0 : i32
    %c0_i32_1 = arith.constant 0 : i32
    return %c0_i32, %c0_i32_0 : i32, i32
  }
  func.func @transform_7(%arg0: i32) -> (i32, i32) {
    %c0_i32 = arith.constant 0 : i32
    %c0_i32_0 = arith.constant 0 : i32
    %c0_i32_1 = arith.constant 0 : i32
    return %c0_i32, %c0_i32_0 : i32, i32
  }
  func.func @transform_8(%arg0: i32) -> (i32, i32) {
    %c0_i32 = arith.constant 0 : i32
    %c0_i32_0 = arith.constant 0 : i32
    return %arg0, %c0_i32 : i32, i32
  }
}

</mosaic_0001>

<bundles_post_ra>
// kernel: tpu_custom_call.1
= control target key start
LH: loop header
LB: loop body
LE: loop exit
PB: predicated region body
PF: predicated region fallthrough
CT: control target
= control target key end

     0   :  { %s2321_s27 = smov 0   ;;  %s2888_s0 = inlined_call_operand.vmem [shape: f32[512,16], index: 0, kind: input, shape index: {}]   ;;  %s2889_s1 = inlined_call_operand.vmem [shape: f32[512,4], index: 1, kind: input, shape index: {}]   ;;  %s2890_s2 = inlined_call_operand.vmem [shape: f32[16,32], index: 2, kind: input, shape index: {}]   ;;  %s2891_s3 = inlined_call_operand.vmem [shape: f32[1,32], index: 3, kind: input, shape index: {}]   ;;  %s2892_s4 = inlined_call_operand.vmem [shape: f32[32,32], index: 4, kind: input, shape index: {}]   ;;  %s2893_s5 = inlined_call_operand.vmem [shape: f32[1,32], index: 5, kind: input, shape index: {}]   ;;  %s2894_s6 = inlined_call_operand.vmem [shape: f32[32,256], index: 6, kind: input, shape index: {}]   ;;  %s2895_s7 = inlined_call_operand.vmem [shape: f32[1,256], index: 7, kind: input, shape index: {}]   ;;  %s2896_s8 = inlined_call_operand.vmem [shape: f32[512,4], index: 8, kind: output, shape index: {}]  }
   0x1 LB: > { %s1821_s28 = sadd.s32 4294967295, %s2273_s27   ;;  %p1825_p0 = scmp.ge.s32.totalorder %s2273_s27, 1  ;;  %s2273_s27 = sphi %s2321_s27, %s18_s27  }
   0x2   : > { %p274_p1 = scmp.lt.s32.totalorder %s2273_s27, 3 }
   0x4   : > { %p275_p2 = pnand %p1825_p0, %p274_p1 }
   0x5   : > { %v363_v0 = vld [vmem:[%s2890_s2] sm:$0xff] (!%p275_p2)  ;;  %v364_v1 = vld [vmem:[%s2890_s2 + $0x8] sm:$0xff] (!%p275_p2)  ;;  %s1826_s11 = sshll.u32 (!%p275_p2), %s1821_s28, 5  ;;  %v728_v6 = vld [vmem:[%s2892_s4 + $0x10] sm:$0xff] (!%p275_p2)  ;;  %vm372_vm0 = vcmask (!%p275_p2), 130048   ;;  %vm737_vm1 = vcmask (!%p275_p2), 261120  }
   0x6   : > { %278 = sbr.rel (%p275_p2) target bundleno = 825 (0x339), region = 52  ;;  %v726_v2 = vld [vmem:[%s2892_s4] sm:$0xff] (!%p275_p2)  ;;  %v2110_v3 = vpack.c.bf16 (!%p275_p2), %v364_v1, %v363_v0  ;;  %p314_p3 = scmp.lt.s32.totalorder (!%p275_p2), %s1826_s11, 63  ;;  %v727_v4 = vld [vmem:[%s2892_s4 + $0x8] sm:$0xff] (!%p275_p2)  ;;  %v729_v7 = vld [vmem:[%s2892_s4 + $0x18] sm:$0xff] (!%p275_p2)  ;;  %vm1720_vm2 = vcmask (!%p275_p2), 31744  }
   0x7   : > { %v2114_v5 = vpack.c.bf16 (!%p275_p2), %v727_v4, %v726_v2  ;;  %v2118_v11 = vpack.c.bf16 (!%p275_p2), %v729_v7, %v728_v6  ;;  %v1092_v41 = vld [vmem:[%s2894_s6 + $0x8] sm:$0xff] (!%p275_p2)  ;;  %v1094_v42 = vld [vmem:[%s2894_s6 + $0x18] sm:$0xff] (!%p275_p2)  ;;  %v1091_v43 = vld [vmem:[%s2894_s6] sm:$0xff] (!%p275_p2) }
   0x8   : > { %2111 = vmatprep.subr.bf16.mxu1 (!%p275_p2), %v2110_v3  ;;  %v2122_v44 = vpack.c.bf16 (!%p275_p2), %v1094_v42, %v1092_v41  ;;  %v1093_v45 = vld [vmem:[%s2894_s6 + $0x10] sm:$0xff] (!%p275_p2)  ;;  %v2434_v47 = vld [vmem:[%s2891_s3] ss:$0 sm:$0xff] (!%p275_p2) }
   0x9   : > { %2113 = vmatpush3.bf16.msra.mxu1 (!%p275_p2), %v2110_v3  ;;  %v2124_v46 = vpack.c.bf16 (!%p275_p2), %v1093_v45, %v1091_v43 }
   0xa   : > { %2115 = vmatprep.subr.bf16.mxu1 (!%p275_p2), %v2114_v5  ;;  %2123 = vmatprep.subr.bf16.mxu0 (!%p275_p2), %v2122_v44 }
   0xb   : > { %2125 = vmatpush1.bf16.msra.mxu0 (!%p275_p2), %v2124_v46 }
   0xd   : > { %s2898_s11 = smov (!%p314_p3, %s1826_s11), 63 }
   0xe   : > { %s2347_s20 = sshll.u32 %s2898_s11, 3 }
   0xf   : > { %s2353_s23 = scalar_lea.vmem %s2888_s0, %s2347_s20  ;;  %s2641_s29 = scalar_lea.vmem %s2889_s1, %s2347_s20 }
  0x10   : > { %v331_v8 = vld [vmem:[%s2353_s23] sm:$0xff]  ;;  %v332_v9 = vld [vmem:[%s2353_s23 + $0x8] sm:$0xff]  ;;  %v333_v10 = vld [vmem:[%s2353_s23 + $0x10] sm:$0xff]  ;;  %s2670_s10 = scalar_lea.vmem %s2896_s8, %s2347_s20 }
  0x11   : > { %2006 = vmatprep.mubr.msk.f32.mxu1 %vm372_vm0, %v331_v8  ;;  %v334_v12 = vld [vmem:[%s2353_s23 + $0x18] sm:$0xff]  ;;  %v335_v13 = vld [vmem:[%s2353_s23 + $0x20] sm:$0xff]  ;;  %v336_v14 = vld [vmem:[%s2353_s23 + $0x28] sm:$0xff] }
  0x12   : > { %2007 = vmatmul.mubr.msk.f32.vlgmr.msra.gmra.mrb[0].mxu1 %vm372_vm0, %v332_v9  ;;  %v337_v15 = vld [vmem:[%s2353_s23 + $0x30] sm:$0xff]  ;;  %v338_v16 = vld [vmem:[%s2353_s23 + $0x38] sm:$0xff]  ;;  %v339_v17 = vld [vmem:[%s2353_s23 + $0x40] sm:$0xff] }
  0x13   : > { %2009 = vmatprep.mubr.msk.f32.mxu1 %vm372_vm0, %v333_v10  ;;  %2117 = vmatpush3.bf16.msra.mxu1 %v2114_v5  ;;  %v340_v18 = vld [vmem:[%s2353_s23 + $0x48] sm:$0xff]  ;;  %v341_v19 = vld [vmem:[%s2353_s23 + $0x50] sm:$0xff]  ;;  %v342_v20 = vld [vmem:[%s2353_s23 + $0x58] sm:$0xff] }
  0x14   : > { %2119 = vmatprep.subr.bf16.mxu1 %v2118_v11  ;;  %v343_v21 = vld [vmem:[%s2353_s23 + $0x60] sm:$0xff]  ;;  %v344_v22 = vld [vmem:[%s2353_s23 + $0x68] sm:$0xff]  ;;  %v345_v23 = vld [vmem:[%s2353_s23 + $0x70] sm:$0xff] }
  0x15   : > { %v346_v24 = vld [vmem:[%s2353_s23 + $0x78] sm:$0xff]  ;;  %v347_v25 = vld [vmem:[%s2353_s23 + $0x80] sm:$0xff]  ;;  %v348_v26 = vld [vmem:[%s2353_s23 + $0x88] sm:$0xff] }
  0x16   : > { %2010 = vmatmul.mubr.msk.f32.gmra.mrb[2].mxu1 %vm372_vm0, %v334_v12  ;;  %v349_v27 = vld [vmem:[%s2353_s23 + $0x90] sm:$0xff]  ;;  %v350_v28 = vld [vmem:[%s2353_s23 + $0x98] sm:$0xff]  ;;  %v351_v29 = vld [vmem:[%s2353_s23 + $0xa0] sm:$0xff] }
  0x17   : > { %2012 = vmatprep.mubr.msk.f32.mxu1 %vm372_vm0, %v335_v13  ;;  %2121 = vmatpush3.bf16.msra.mxu1 %v2118_v11  ;;  %v352_v30 = vld [vmem:[%s2353_s23 + $0xa8] sm:$0xff]  ;;  %v353_v31 = vld [vmem:[%s2353_s23 + $0xb0] sm:$0xff]  ;;  %v354_v32 = vld [vmem:[%s2353_s23 + $0xb8] sm:$0xff] }
  0x18   : > { %v355_v33 = vld [vmem:[%s2353_s23 + $0xc0] sm:$0xff]  ;;  %v356_v34 = vld [vmem:[%s2353_s23 + $0xc8] sm:$0xff]  ;;  %v357_v35 = vld [vmem:[%s2353_s23 + $0xd0] sm:$0xff] }
  0x19   : > { %v358_v36 = vld [vmem:[%s2353_s23 + $0xd8] sm:$0xff]  ;;  %v359_v37 = vld [vmem:[%s2353_s23 + $0xe0] sm:$0xff]  ;;  %v360_v38 = vld [vmem:[%s2353_s23 + $0xe8] sm:$0xff] }
  0x1a   : > { %2013 = vmatmul.mubr.msk.f32.gmra.mrb[4].mxu1 %vm372_vm0, %v336_v14  ;;  %v361_v39 = vld [vmem:[%s2353_s23 + $0xf0] sm:$0xff]  ;;  %v362_v40 = vld [vmem:[%s2353_s23 + $0xf8] sm:$0xff] }
  0x1b   : > { %2015 = vmatprep.mubr.msk.f32.mxu1 %vm372_vm0, %v337_v15 }
  0x1e   : > { %2016 = vmatmul.mubr.msk.f32.gmra.mrb[6].mxu1 %vm372_vm0, %v338_v16 }
  0x1f   : > { %2018 = vmatprep.mubr.msk.f32.mxu1 %vm372_vm0, %v339_v17 }
  0x22   : > { %2019 = vmatmul.mubr.msk.f32.gmra.mrb[8].mxu1 %vm372_vm0, %v340_v18 }
  0x23   : > { %2021 = vmatprep.mubr.msk.f32.mxu1 %vm372_vm0, %v341_v19 }
  0x26   : > { %2022 = vmatmul.mubr.msk.f32.gmra.mrb[10].mxu1 %vm372_vm0, %v342_v20 }
  0x27   : > { %2024 = vmatprep.mubr.msk.f32.mxu1 %vm372_vm0, %v343_v21 }
  0x2a   : > { %2025 = vmatmul.mubr.msk.f32.gmra.mrb[12].mxu1 %vm372_vm0, %v344_v22 }
  0x2b   : > { %2027 = vmatprep.mubr.msk.f32.mxu1 %vm372_vm0, %v345_v23 }
  0x2e   : > { %2028 = vmatmul.mubr.msk.f32.gmra.mrb[14].mxu1 %vm372_vm0, %v346_v24 }
  0x2f   : > { %2030 = vmatprep.mubr.msk.f32.mxu1 %vm372_vm0, %v347_v25 }
  0x32   : > { %2031 = vmatmul.mubr.msk.f32.gmra.mrb[16].mxu1 %vm372_vm0, %v348_v26 }
  0x33   : > { %2033 = vmatprep.mubr.msk.f32.mxu1 %vm372_vm0, %v349_v27 }
  0x36   : > { %2034 = vmatmul.mubr.msk.f32.gmra.mrb[18].mxu1 %vm372_vm0, %v350_v28 }
  0x37   : > { %2036 = vmatprep.mubr.msk.f32.mxu1 %vm372_vm0, %v351_v29 }
  0x3a   : > { %2037 = vmatmul.mubr.msk.f32.gmra.mrb[20].mxu1 %vm372_vm0, %v352_v30 }
  0x3b   : > { %2039 = vmatprep.mubr.msk.f32.mxu1 %vm372_vm0, %v353_v31 }
  0x3e   : > { %2040 = vmatmul.mubr.msk.f32.gmra.mrb[22].mxu1 %vm372_vm0, %v354_v32 }
  0x3f   : > { %2042 = vmatprep.mubr.msk.f32.mxu1 %vm372_vm0, %v355_v33 }
  0x42   : > { %2043 = vmatmul.mubr.msk.f32.gmra.mrb[24].mxu1 %vm372_vm0, %v356_v34 }
  0x43   : > { %2045 = vmatprep.mubr.msk.f32.mxu1 %vm372_vm0, %v357_v35 }
  0x46   : > { %2046 = vmatmul.mubr.msk.f32.gmra.mrb[26].mxu1 %vm372_vm0, %v358_v36 }
  0x47   : > { %2048 = vmatprep.mubr.msk.f32.mxu1 %vm372_vm0, %v359_v37 }
  0x4a   : > { %2049 = vmatmul.mubr.msk.f32.gmra.mrb[28].mxu1 %vm372_vm0, %v360_v38 }
  0x4b   : > { %2051 = vmatprep.mubr.msk.f32.mxu1 %vm372_vm0, %v361_v39 }
  0x4e   : > { %2052 = vmatmul.mubr.msk.f32.gmra.mrb[30].mxu1 %vm372_vm0, %v362_v40 }
  0xe5   : > { %v2008_v48 = vpop.f32.mrb[0].mxu1 }
  0xe6   : > { %v541_v49 = vadd.f32 %v2008_v48, %v2434_v47  ;;  %v535_v50 = vpop.f32.mrb[1].mxu1 }
  0xe7   : > { %v536_v51 = vadd.f32 %v2434_v47, %v535_v50 }
  0xe8   : > { %v695_v54 = vmax.f32 %v541_v49, 0.0 }
  0xe9   : > { %v694_v52 = vmax.f32 %v536_v51, 0.0  ;;  %v2011_v53 = vpop.f32.mrb[2].mxu1 }
  0xea   : > { %v551_v55 = vadd.f32 %v2011_v53, %v2434_v47  ;;  %v545_v56 = vpop.f32.mrb[3].mxu1 }
  0xeb   : > { %v546_v57 = vadd.f32 %v2434_v47, %v545_v56  ;;  %2062 = vmatprep.mubr.msk.f32.mxu1 %vm737_vm1, %v694_v52 }
  0xec   : > { %v697_v58 = vmax.f32 %v551_v55, 0.0  ;;  %2063 = vmatmul.mubr.msk.f32.vlgmr.msra.gmra.mrb[32].mxu1 %vm737_vm1, %v695_v54 }
  0xed   : > { %v696_v59 = vmax.f32 %v546_v57, 0.0  ;;  %v2014_v60 = vpop.f32.mrb[4].mxu1 }
  0xee   : > { %v561_v61 = vadd.f32 %v2014_v60, %v2434_v47  ;;  %v555_v62 = vpop.f32.mrb[5].mxu1 }
  0xef   : > { %2065 = vmatprep.mubr.msk.f32.mxu1 %vm737_vm1, %v696_v59  ;;  %v556_v63 = vadd.f32 %v2434_v47, %v555_v62 }
  0xf0   : > { %2066 = vmatmul.mubr.msk.f32.gmra.mrb[34].mxu1 %vm737_vm1, %v697_v58  ;;  %v699_v0 = vmax.f32 %v561_v61, 0.0 }
  0xf1   : > { %v698_v1 = vmax.f32 %v556_v63, 0.0  ;;  %v2017_v2 = vpop.f32.mrb[6].mxu1 }
  0xf2   : > { %v571_v3 = vadd.f32 %v2017_v2, %v2434_v47  ;;  %v565_v4 = vpop.f32.mrb[7].mxu1 }
  0xf3   : > { %2068 = vmatprep.mubr.msk.f32.mxu1 %vm737_vm1, %v698_v1  ;;  %v566_v5 = vadd.f32 %v2434_v47, %v565_v4 }
  0xf4   : > { %2069 = vmatmul.mubr.msk.f32.gmra.mrb[36].mxu1 %vm737_vm1, %v699_v0  ;;  %v701_v6 = vmax.f32 %v571_v3, 0.0 }
  0xf5   : > { %v700_v7 = vmax.f32 %v566_v5, 0.0  ;;  %v2020_v8 = vpop.f32.mrb[8].mxu1 }
  0xf6   : > { %v581_v9 = vadd.f32 %v2020_v8, %v2434_v47  ;;  %v575_v10 = vpop.f32.mrb[9].mxu1 }
  0xf7   : > { %2071 = vmatprep.mubr.msk.f32.mxu1 %vm737_vm1, %v700_v7  ;;  %v576_v11 = vadd.f32 %v2434_v47, %v575_v10 }
  0xf8   : > { %2072 = vmatmul.mubr.msk.f32.gmra.mrb[38].mxu1 %vm737_vm1, %v701_v6  ;;  %v703_v12 = vmax.f32 %v581_v9, 0.0 }
  0xf9   : > { %v702_v13 = vmax.f32 %v576_v11, 0.0  ;;  %v2023_v14 = vpop.f32.mrb[10].mxu1 }
  0xfa   : > { %v591_v15 = vadd.f32 %v2023_v14, %v2434_v47  ;;  %v585_v16 = vpop.f32.mrb[11].mxu1 }
  0xfb   : > { %2074 = vmatprep.mubr.msk.f32.mxu1 %vm737_vm1, %v702_v13  ;;  %v586_v17 = vadd.f32 %v2434_v47, %v585_v16 }
  0xfc   : > { %2075 = vmatmul.mubr.msk.f32.gmra.mrb[40].mxu1 %vm737_vm1, %v703_v12  ;;  %v705_v18 = vmax.f32 %v591_v15, 0.0 }
  0xfd   : > { %v704_v19 = vmax.f32 %v586_v17, 0.0  ;;  %v2026_v20 = vpop.f32.mrb[12].mxu1  ;;  %v1096_v17 = vld [vmem:[%s2894_s6 + $0x28] sm:$0xff] }
  0xfe   : > { %v601_v21 = vadd.f32 %v2026_v20, %v2434_v47  ;;  %v595_v22 = vpop.f32.mrb[13].mxu1  ;;  %v1097_v20 = vld [vmem:[%s2894_s6 + $0x30] sm:$0xff] }
  0xff   : > { %2077 = vmatprep.mubr.msk.f32.mxu1 %vm737_vm1, %v704_v19  ;;  %v596_v23 = vadd.f32 %v2434_v47, %v595_v22  ;;  %v2275_v22 = vmov 0.0  }
 0x100   : > { %2078 = vmatmul.mubr.msk.f32.gmra.mrb[42].mxu1 %vm737_vm1, %v705_v18  ;;  %v707_v24 = vmax.f32 %v601_v21, 0.0  ;;  %v1098_v18 = vld [vmem:[%s2894_s6 + $0x38] sm:$0xff]  ;;  %1271 = vmatprep.mubr.f32.mxu0 %v2275_v22 }
 0x101   : > { %v706_v25 = vmax.f32 %v596_v23, 0.0  ;;  %v2029_v26 = vpop.f32.mrb[14].mxu1  ;;  %v2126_v19 = vpack.c.bf16 %v1098_v18, %v1096_v17  ;;  %v2516_v23 = vld [vmem:[%s2893_s5] ss:$0 sm:$0xff] }
 0x102   : > { %v611_v27 = vadd.f32 %v2029_v26, %v2434_v47  ;;  %v605_v28 = vpop.f32.mrb[15].mxu1 }
 0x103   : > { %2080 = vmatprep.mubr.msk.f32.mxu1 %vm737_vm1, %v706_v25  ;;  %v606_v29 = vadd.f32 %v2434_v47, %v605_v28  ;;  %2127 = vmatprep.subr.bf16.mxu0 %v2126_v19 }
 0x104   : > { %2081 = vmatmul.mubr.msk.f32.gmra.mrb[44].mxu1 %vm737_vm1, %v707_v24  ;;  %v709_v30 = vmax.f32 %v611_v27, 0.0 }
 0x105   : > { %v708_v31 = vmax.f32 %v606_v29, 0.0  ;;  %v2032_v32 = vpop.f32.mrb[16].mxu1 }
 0x106   : > { %v621_v33 = vadd.f32 %v2032_v32, %v2434_v47  ;;  %v615_v34 = vpop.f32.mrb[17].mxu1 }
 0x107   : > { %2083 = vmatprep.mubr.msk.f32.mxu1 %vm737_vm1, %v708_v31  ;;  %v616_v35 = vadd.f32 %v2434_v47, %v615_v34 }
 0x108   : > { %2084 = vmatmul.mubr.msk.f32.gmra.mrb[46].mxu1 %vm737_vm1, %v709_v30  ;;  %v711_v36 = vmax.f32 %v621_v33, 0.0 }
 0x109   : > { %v710_v37 = vmax.f32 %v616_v35, 0.0  ;;  %v2035_v38 = vpop.f32.mrb[18].mxu1 }
 0x10a   : > { %v631_v39 = vadd.f32 %v2035_v38, %v2434_v47  ;;  %v625_v40 = vpop.f32.mrb[19].mxu1 }
 0x10b   : > { %2086 = vmatprep.mubr.msk.f32.mxu1 %vm737_vm1, %v710_v37  ;;  %v626_v41 = vadd.f32 %v2434_v47, %v625_v40 }
 0x10c   : > { %2087 = vmatmul.mubr.msk.f32.gmra.mrb[48].mxu1 %vm737_vm1, %v711_v36  ;;  %v713_v42 = vmax.f32 %v631_v39, 0.0 }
 0x10d   : > { %v712_v43 = vmax.f32 %v626_v41, 0.0  ;;  %v2038_v44 = vpop.f32.mrb[20].mxu1 }
 0x10e   : > { %v641_v45 = vadd.f32 %v2038_v44, %v2434_v47  ;;  %v635_v46 = vpop.f32.mrb[21].mxu1 }
 0x10f   : > { %2089 = vmatprep.mubr.msk.f32.mxu1 %vm737_vm1, %v712_v43  ;;  %v636_v48 = vadd.f32 %v2434_v47, %v635_v46 }
 0x110   : > { %2090 = vmatmul.mubr.msk.f32.gmra.mrb[50].mxu1 %vm737_vm1, %v713_v42  ;;  %v715_v49 = vmax.f32 %v641_v45, 0.0 }
 0x111   : > { %v714_v50 = vmax.f32 %v636_v48, 0.0  ;;  %v2041_v51 = vpop.f32.mrb[22].mxu1 }
 0x112   : > { %v651_v52 = vadd.f32 %v2041_v51, %v2434_v47  ;;  %v645_v53 = vpop.f32.mrb[23].mxu1 }
 0x113   : > { %2092 = vmatprep.mubr.msk.f32.mxu1 %vm737_vm1, %v714_v50  ;;  %v646_v54 = vadd.f32 %v2434_v47, %v645_v53 }
 0x114   : > { %2093 = vmatmul.mubr.msk.f32.gmra.mrb[52].mxu1 %vm737_vm1, %v715_v49  ;;  %v717_v55 = vmax.f32 %v651_v52, 0.0 }
 0x115   : > { %v716_v56 = vmax.f32 %v646_v54, 0.0  ;;  %v2044_v57 = vpop.f32.mrb[24].mxu1 }
 0x116   : > { %v661_v58 = vadd.f32 %v2044_v57, %v2434_v47  ;;  %v655_v59 = vpop.f32.mrb[25].mxu1 }
 0x117   : > { %2095 = vmatprep.mubr.msk.f32.mxu1 %vm737_vm1, %v716_v56  ;;  %v656_v60 = vadd.f32 %v2434_v47, %v655_v59 }
 0x118   : > { %2096 = vmatmul.mubr.msk.f32.gmra.mrb[54].mxu1 %vm737_vm1, %v717_v55  ;;  %v719_v61 = vmax.f32 %v661_v58, 0.0 }
 0x119   : > { %v718_v62 = vmax.f32 %v656_v60, 0.0  ;;  %v2047_v63 = vpop.f32.mrb[26].mxu1 }
 0x11a   : > { %v671_v0 = vadd.f32 %v2047_v63, %v2434_v47  ;;  %v665_v1 = vpop.f32.mrb[27].mxu1 }
 0x11b   : > { %2098 = vmatprep.mubr.msk.f32.mxu1 %vm737_vm1, %v718_v62  ;;  %v666_v2 = vadd.f32 %v2434_v47, %v665_v1 }
 0x11c   : > { %2099 = vmatmul.mubr.msk.f32.gmra.mrb[56].mxu1 %vm737_vm1, %v719_v61  ;;  %v721_v3 = vmax.f32 %v671_v0, 0.0 }
 0x11d   : > { %v720_v4 = vmax.f32 %v666_v2, 0.0  ;;  %v2050_v5 = vpop.f32.mrb[28].mxu1 }
 0x11e   : > { %v681_v6 = vadd.f32 %v2050_v5, %v2434_v47  ;;  %v675_v7 = vpop.f32.mrb[29].mxu1 }
 0x11f   : > { %2101 = vmatprep.mubr.msk.f32.mxu1 %vm737_vm1, %v720_v4  ;;  %v676_v8 = vadd.f32 %v2434_v47, %v675_v7 }
 0x120   : > { %2102 = vmatmul.mubr.msk.f32.gmra.mrb[58].mxu1 %vm737_vm1, %v721_v3  ;;  %v723_v9 = vmax.f32 %v681_v6, 0.0 }
 0x121   : > { %v722_v10 = vmax.f32 %v676_v8, 0.0  ;;  %v2053_v11 = vpop.f32.mrb[30].mxu1 }
 0x122   : > { %v691_v12 = vadd.f32 %v2053_v11, %v2434_v47  ;;  %v685_v13 = vpop.f32.mrb[31].mxu1 }
 0x123   : > { %2104 = vmatprep.mubr.msk.f32.mxu1 %vm737_vm1, %v722_v10  ;;  %v686_v14 = vadd.f32 %v2434_v47, %v685_v13  ;;  %v1095_v47 = vld [vmem:[%s2894_s6 + $0x20] sm:$0xff] }
 0x124   : > { %2105 = vmatmul.mubr.msk.f32.gmra.mrb[60].mxu1 %vm737_vm1, %v723_v9  ;;  %v725_v15 = vmax.f32 %v691_v12, 0.0  ;;  %v2128_v21 = vpack.c.bf16 %v1097_v20, %v1095_v47 }
 0x125   : > { %v724_v16 = vmax.f32 %v686_v14, 0.0 }
 0x126   : > { %2129 = vmatpush1.bf16.msra.mxu0 %v2128_v21 }
 0x127   : > { %2107 = vmatprep.mubr.msk.f32.mxu1 %vm737_vm1, %v724_v16 }
 0x128   : > { %2108 = vmatmul.mubr.msk.f32.gmra.mrb[62].mxu1 %vm737_vm1, %v725_v15 }
 0x1bf   : > { %v2064_v24 = vpop.f32.mrb[32].mxu1 }
 0x1c0   : > { %v900_v25 = vpop.f32.mrb[33].mxu1  ;;  %v906_v27 = vadd.f32 %v2064_v24, %v2516_v23 }
 0x1c1   : > { %v901_v26 = vadd.f32 %v2516_v23, %v900_v25 }
 0x1c2   : > { %v1060_v31 = vmax.f32 %v906_v27, 0.0 }
 0x1c3   : > { %v1059_v28 = vmax.f32 %v901_v26, 0.0  ;;  %v2067_v29 = vpop.f32.mrb[34].mxu1 }
 0x1c4   : > { %v910_v30 = vpop.f32.mrb[35].mxu1  ;;  %v916_v35 = vadd.f32 %v2067_v29, %v2516_v23 }
 0x1c5   : > { %1898 = vmatmul.mubr.msk.f32.vlgmr.msra.gmra.mrb[0].mxu0 %vm737_vm1, %v1059_v28  ;;  %v911_v32 = vadd.f32 %v2516_v23, %v910_v30 }
 0x1c6   : > { %1277 = vmatprep.mubr.f32.mxu0 %v2275_v22  ;;  %v1062_v39 = vmax.f32 %v916_v35, 0.0 }
 0x1c7   : > { %v2070_v33 = vpop.f32.mrb[36].mxu1  ;;  %v1061_v36 = vmax.f32 %v911_v32, 0.0 }
 0x1c8   : > { %v920_v34 = vpop.f32.mrb[37].mxu1  ;;  %v926_v43 = vadd.f32 %v2070_v33, %v2516_v23 }
 0x1c9   : > { %1899 = vmatmul.mubr.msk.f32.gmra.mrb[2].mxu0 %vm737_vm1, %v1060_v31  ;;  %v921_v40 = vadd.f32 %v2516_v23, %v920_v34 }
 0x1ca   : > { %1283 = vmatprep.mubr.f32.mxu0 %v2275_v22  ;;  %v1064_v48 = vmax.f32 %v926_v43, 0.0 }
 0x1cb   : > { %v2073_v37 = vpop.f32.mrb[38].mxu1  ;;  %v1063_v44 = vmax.f32 %v921_v40, 0.0 }
 0x1cc   : > { %v930_v38 = vpop.f32.mrb[39].mxu1  ;;  %v936_v52 = vadd.f32 %v2073_v37, %v2516_v23 }
 0x1cd   : > { %1900 = vmatmul.mubr.msk.f32.gmra.mrb[4].mxu0 %vm737_vm1, %v1061_v36  ;;  %v931_v49 = vadd.f32 %v2516_v23, %v930_v38 }
 0x1ce   : > { %1289 = vmatprep.mubr.f32.mxu0 %v2275_v22  ;;  %v1066_v56 = vmax.f32 %v936_v52, 0.0 }
 0x1cf   : > { %v2076_v41 = vpop.f32.mrb[40].mxu1  ;;  %v1065_v53 = vmax.f32 %v931_v49, 0.0 }
 0x1d0   : > { %v940_v42 = vpop.f32.mrb[41].mxu1  ;;  %v946_v62 = vadd.f32 %v2076_v41, %v2516_v23 }
 0x1d1   : > { %1901 = vmatmul.mubr.msk.f32.gmra.mrb[6].mxu0 %vm737_vm1, %v1062_v39  ;;  %v941_v57 = vadd.f32 %v2516_v23, %v940_v42 }
 0x1d2   : > { %1295 = vmatprep.mubr.f32.mxu0 %v2275_v22  ;;  %v1068_v4 = vmax.f32 %v946_v62, 0.0 }
 0x1d3   : > { %v2079_v45 = vpop.f32.mrb[42].mxu1  ;;  %v1067_v63 = vmax.f32 %v941_v57, 0.0 }
 0x1d4   : > { %v950_v46 = vpop.f32.mrb[43].mxu1  ;;  %v956_v10 = vadd.f32 %v2079_v45, %v2516_v23 }
 0x1d5   : > { %1902 = vmatmul.mubr.msk.f32.gmra.mrb[8].mxu0 %vm737_vm1, %v1063_v44  ;;  %v951_v5 = vadd.f32 %v2516_v23, %v950_v46 }
 0x1d6   : > { %1301 = vmatprep.mubr.f32.mxu0 %v2275_v22  ;;  %v1070_v16 = vmax.f32 %v956_v10, 0.0 }
 0x1d7   : > { %v2082_v50 = vpop.f32.mrb[44].mxu1  ;;  %v1069_v11 = vmax.f32 %v951_v5, 0.0 }
 0x1d8   : > { %v960_v51 = vpop.f32.mrb[45].mxu1  ;;  %v966_v21 = vadd.f32 %v2082_v50, %v2516_v23 }
 0x1d9   : > { %1903 = vmatmul.mubr.msk.f32.gmra.mrb[10].mxu0 %vm737_vm1, %v1064_v48  ;;  %v961_v17 = vadd.f32 %v2516_v23, %v960_v51 }
 0x1da   : > { %1307 = vmatprep.mubr.f32.mxu0 %v2275_v22  ;;  %v1072_v29 = vmax.f32 %v966_v21, 0.0 }
 0x1db   : > { %v2085_v54 = vpop.f32.mrb[46].mxu1  ;;  %v1071_v24 = vmax.f32 %v961_v17, 0.0 }
 0x1dc   : > { %v970_v55 = vpop.f32.mrb[47].mxu1  ;;  %v976_v35 = vadd.f32 %v2085_v54, %v2516_v23 }
 0x1dd   : > { %1904 = vmatmul.mubr.msk.f32.gmra.mrb[12].mxu0 %vm737_vm1, %v1065_v53  ;;  %v971_v30 = vadd.f32 %v2516_v23, %v970_v55 }
 0x1de   : > { %1313 = vmatprep.mubr.f32.mxu0 %v2275_v22  ;;  %v1074_v41 = vmax.f32 %v976_v35, 0.0  ;;  %v1593_v35 = vld [vmem:[%s2641_s29 + $0x8] sm:$0xff] }
 0x1df   : > { %v2088_v58 = vpop.f32.mrb[48].mxu1  ;;  %v1073_v36 = vmax.f32 %v971_v30, 0.0 }
 0x1e0   : > { %v2542_v59 = vadd.f32 %v2088_v58, %v2516_v23  ;;  %v980_v60 = vpop.f32.mrb[49].mxu1  ;;  %v1101_v58 = vlaneseq }
 0x1e1   : > { %1905 = vmatmul.mubr.msk.f32.gmra.mrb[14].mxu0 %vm737_vm1, %v1066_v56  ;;  %v2546_v61 = vadd.f32 %v2516_v23, %v980_v60 }
 0x1e2   : > { %1319 = vmatprep.mubr.f32.mxu0 %v2275_v22  ;;  %v1076_v43 = vmax.f32 %v2542_v59, 0.0  ;;  %v1102_v59 = vshrl.u32 %v1101_v58, 7 }
 0x1e3   : > { %v2091_v0 = vpop.f32.mrb[50].mxu1  ;;  %v1075_v42 = vmax.f32 %v2546_v61, 0.0  ;;  %v1099_v61 = vld [vmem:[%s2895_s7] sm:$0x3] }
 0x1e4   : > { %v2551_v1 = vadd.f32 %v2091_v0, %v2516_v23  ;;  %v990_v2 = vpop.f32.mrb[51].mxu1  ;;  %v1107_v60 = vsub.s32 1, %v1102_v59 }
 0x1e5   : > { %1906 = vmatmul.mubr.msk.f32.gmra.mrb[16].mxu0 %vm737_vm1, %v1067_v63  ;;  %v991_v3 = vadd.f32 %v2516_v23, %v990_v2 }
 0x1e6   : > { %1325 = vmatprep.mubr.f32.mxu0 %v2275_v22  ;;  %v1078_v44 = vmax.f32 %v2551_v1, 0.0  ;;  %v2631_v62 = vrot.slane %v1099_v61, %v1107_v60 }
 0x1e7   : > { %v2094_v6 = vpop.f32.mrb[52].mxu1 }
 0x1e8   : > { %v2558_v7 = vadd.f32 %v2094_v6, %v2516_v23  ;;  %v1000_v8 = vpop.f32.mrb[53].mxu1 }
 0x1e9   : > { %1907 = vmatmul.mubr.msk.f32.gmra.mrb[18].mxu0 %vm737_vm1, %v1068_v4  ;;  %v1001_v9 = vadd.f32 %v2516_v23, %v1000_v8 }
 0x1ea   : > { %1331 = vmatprep.mubr.f32.mxu0 %v2275_v22  ;;  %v1080_v46 = vmax.f32 %v2558_v7, 0.0 }
 0x1eb   : > { %v2097_v12 = vpop.f32.mrb[54].mxu1  ;;  %v1079_v45 = vmax.f32 %v1001_v9, 0.0 }
 0x1ec   : > { %v2565_v13 = vadd.f32 %v2097_v12, %v2516_v23  ;;  %v1010_v14 = vpop.f32.mrb[55].mxu1 }
 0x1ed   : > { %1908 = vmatmul.mubr.msk.f32.gmra.mrb[20].mxu0 %vm737_vm1, %v1069_v11  ;;  %v1011_v15 = vadd.f32 %v2516_v23, %v1010_v14 }
 0x1ee   : > { %1337 = vmatprep.mubr.f32.mxu0 %v2275_v22  ;;  %v1082_v49 = vmax.f32 %v2565_v13, 0.0 }
 0x1ef   : > { %v2100_v18 = vpop.f32.mrb[56].mxu1  ;;  %v1081_v48 = vmax.f32 %v1011_v15, 0.0  ;;  %v1103_v15 = vsub.s32 0, %v1102_v59 }
 0x1f0   : > { %v1026_v19 = vadd.f32 %v2100_v18, %v2516_v23  ;;  %v1020_v47 = vpop.f32.mrb[57].mxu1 }
 0x1f1   : > { %1909 = vmatmul.mubr.msk.f32.gmra.mrb[22].mxu0 %vm737_vm1, %v1070_v16  ;;  %v1021_v20 = vadd.f32 %v2516_v23, %v1020_v47  ;;  %v2645_v21 = vrot.slane %v1099_v61, %v1103_v15 }
 0x1f2   : > { %1343 = vmatprep.mubr.f32.mxu0 %v2275_v22  ;;  %v1084_v51 = vmax.f32 %v1026_v19, 0.0 }
 0x1f3   : > { %v2103_v25 = vpop.f32.mrb[58].mxu1  ;;  %v1083_v50 = vmax.f32 %v1021_v20, 0.0 }
 0x1f4   : > { %v1036_v26 = vadd.f32 %v2103_v25, %v2516_v23  ;;  %v1030_v27 = vpop.f32.mrb[59].mxu1  ;;  %v1592_v25 = vld [vmem:[%s2641_s29] sm:$0xff] }
 0x1f5   : > { %1910 = vmatmul.mubr.msk.f32.gmra.mrb[24].mxu0 %vm737_vm1, %v1071_v24  ;;  %v1031_v28 = vadd.f32 %v2516_v23, %v1030_v27 }
 0x1f6   : > { %1349 = vmatprep.mubr.f32.mxu0 %v2275_v22  ;;  %v1086_v53 = vmax.f32 %v1036_v26, 0.0 }
 0x1f7   : > { %v2106_v31 = vpop.f32.mrb[60].mxu1  ;;  %v1085_v52 = vmax.f32 %v1031_v28, 0.0 }
 0x1f8   : > { %v1046_v32 = vadd.f32 %v2106_v31, %v2516_v23  ;;  %v1040_v33 = vpop.f32.mrb[61].mxu1 }
 0x1f9   : > { %1911 = vmatmul.mubr.msk.f32.gmra.mrb[26].mxu0 %vm737_vm1, %v1072_v29  ;;  %v1041_v34 = vadd.f32 %v2516_v23, %v1040_v33 }
 0x1fa   : > { %1355 = vmatprep.mubr.f32.mxu0 %v2275_v22  ;;  %v1088_v55 = vmax.f32 %v1046_v32, 0.0 }
 0x1fb   : > { %v2109_v37 = vpop.f32.mrb[62].mxu1  ;;  %v1087_v54 = vmax.f32 %v1041_v34, 0.0 }
 0x1fc   : > { %v1056_v38 = vadd.f32 %v2109_v37, %v2516_v23  ;;  %v1050_v39 = vpop.f32.mrb[63].mxu1 }
 0x1fd   : > { %1912 = vmatmul.mubr.msk.f32.gmra.mrb[28].mxu0 %vm737_vm1, %v1073_v36  ;;  %v1051_v40 = vadd.f32 %v2516_v23, %v1050_v39  ;;  %v1077_v23 = vmax.f32 %v991_v3, 0.0 }
 0x1fe   : > { %1361 = vmatprep.mubr.f32.mxu0 %v2275_v22  ;;  %v1090_v57 = vmax.f32 %v1056_v38, 0.0 }
 0x1ff   : > { %v1089_v56 = vmax.f32 %v1051_v40, 0.0 }
 0x201   : > { %1913 = vmatmul.mubr.msk.f32.gmra.mrb[30].mxu0 %vm737_vm1, %v1074_v41 }
 0x202   : > { %1367 = vmatprep.mubr.f32.mxu0 %v2275_v22 }
 0x205   : > { %1914 = vmatmul.mubr.msk.f32.gmra.mrb[32].mxu0 %vm737_vm1, %v1075_v42 }
 0x206   : > { %1373 = vmatprep.mubr.f32.mxu0 %v2275_v22 }
 0x209   : > { %1915 = vmatmul.mubr.msk.f32.gmra.mrb[34].mxu0 %vm737_vm1, %v1076_v43 }
 0x20a   : > { %1379 = vmatprep.mubr.f32.mxu0 %v2275_v22 }
 0x20d   : > { %1916 = vmatmul.mubr.msk.f32.gmra.mrb[36].mxu0 %vm737_vm1, %v1077_v23 }
 0x20e   : > { %1385 = vmatprep.mubr.f32.mxu0 %v2275_v22 }
 0x211   : > { %1917 = vmatmul.mubr.msk.f32.gmra.mrb[38].mxu0 %vm737_vm1, %v1078_v44 }
 0x212   : > { %1391 = vmatprep.mubr.f32.mxu0 %v2275_v22 }
 0x215   : > { %1918 = vmatmul.mubr.msk.f32.gmra.mrb[40].mxu0 %vm737_vm1, %v1079_v45  ;;  %v1594_v45 = vld [vmem:[%s2641_s29 + $0x10] sm:$0xff] }
 0x216   : > { %1397 = vmatprep.mubr.f32.mxu0 %v2275_v22 }
 0x219   : > { %1919 = vmatmul.mubr.msk.f32.gmra.mrb[42].mxu0 %vm737_vm1, %v1080_v46 }
 0x21a   : > { %1403 = vmatprep.mubr.f32.mxu0 %v2275_v22 }
 0x21d   : > { %1920 = vmatmul.mubr.msk.f32.gmra.mrb[44].mxu0 %vm737_vm1, %v1081_v48 }
 0x21e   : > { %1409 = vmatprep.mubr.f32.mxu0 %v2275_v22 }
 0x221   : > { %1921 = vmatmul.mubr.msk.f32.gmra.mrb[46].mxu0 %vm737_vm1, %v1082_v49 }
 0x222   : > { %1415 = vmatprep.mubr.f32.mxu0 %v2275_v22 }
 0x225   : > { %1922 = vmatmul.mubr.msk.f32.gmra.mrb[48].mxu0 %vm737_vm1, %v1083_v50 }
 0x226   : > { %1421 = vmatprep.mubr.f32.mxu0 %v2275_v22 }
 0x229   : > { %1923 = vmatmul.mubr.msk.f32.gmra.mrb[50].mxu0 %vm737_vm1, %v1084_v51 }
 0x22a   : > { %1427 = vmatprep.mubr.f32.mxu0 %v2275_v22 }
 0x22d   : > { %1924 = vmatmul.mubr.msk.f32.gmra.mrb[52].mxu0 %vm737_vm1, %v1085_v52 }
 0x22e   : > { %1433 = vmatprep.mubr.f32.mxu0 %v2275_v22 }
 0x231   : > { %1925 = vmatmul.mubr.msk.f32.gmra.mrb[54].mxu0 %vm737_vm1, %v1086_v53 }
 0x232   : > { %1439 = vmatprep.mubr.f32.mxu0 %v2275_v22 }
 0x235   : > { %1926 = vmatmul.mubr.msk.f32.gmra.mrb[56].mxu0 %vm737_vm1, %v1087_v54 }
 0x236   : > { %1445 = vmatprep.mubr.f32.mxu0 %v2275_v22 }
 0x239   : > { %1927 = vmatmul.mubr.msk.f32.gmra.mrb[58].mxu0 %vm737_vm1, %v1088_v55 }
 0x23a   : > { %1451 = vmatprep.mubr.f32.mxu0 %v2275_v22 }
 0x23d   : > { %1928 = vmatmul.mubr.msk.f32.gmra.mrb[60].mxu0 %vm737_vm1, %v1089_v56 }
 0x23e   : > { %1457 = vmatprep.mubr.f32.mxu0 %v2275_v22 }
 0x241   : > { %1929 = vmatmul.mubr.msk.f32.gmra.mrb[62].mxu0 %vm737_vm1, %v1090_v57  ;;  %v1595_v57 = vld [vmem:[%s2641_s29 + $0x18] sm:$0xff] }
 0x298   : > { %v1273_v63 = vpop.f32.mrb[0].mxu0 }
 0x299   : > { %v1275_v0 = vpop.f32.mrb[1].mxu0  ;;  %v1274_v32 = vadd.f32 %v1273_v63, %v2645_v21 }
 0x29a   : > { %v1276_v1 = vadd.f32 %v1275_v0, %v2631_v62 }
 0x29c   : > { %v1464_v2 = vmax.f32 %v1276_v1, -20.0  ;;  %v1279_v3 = vpop.f32.mrb[2].mxu0 }
 0x29d   : > { %v1281_v4 = vpop.f32.mrb[3].mxu0  ;;  %v1280_v43 = vadd.f32 %v1279_v3, %v2645_v21 }
 0x29e   : > { %v1496_v22 = vmin.f32 %v1464_v2, 2.0  ;;  %v1282_v5 = vadd.f32 %v1281_v4, %v2631_v62 }
 0x2a0   : > { %v1528_v6 = vmul.f32 1.442695, %v1496_v22  ;;  %v1465_v7 = vmax.f32 %v1282_v5, -20.0  ;;  %v1285_v8 = vpop.f32.mrb[4].mxu0  ;;  %v1596_v22 = vld [vmem:[%s2641_s29 + $0x20] sm:$0xff] }
 0x2a1   : > { %v1287_v9 = vpop.f32.mrb[5].mxu0  ;;  %v1286_v54 = vadd.f32 %v1285_v8, %v2645_v21 }
 0x2a2   : > { %2139 = vpow2.f32 %v1528_v6  ;;  %v1497_v10 = vmin.f32 %v1465_v7, 2.0  ;;  %v1288_v11 = vadd.f32 %v1287_v9, %v2631_v62 }
 0x2a4   : > { %v1530_v12 = vmul.f32 1.442695, %v1497_v10  ;;  %v1466_v13 = vmax.f32 %v1288_v11, -20.0  ;;  %v1291_v14 = vpop.f32.mrb[6].mxu0 }
 0x2a5   : > { %v1293_v16 = vpop.f32.mrb[7].mxu0  ;;  %v1292_v2 = vadd.f32 %v1291_v14, %v2645_v21 }
 0x2a6   : > { %2141 = vpow2.f32 %v1530_v12  ;;  %v1498_v17 = vmin.f32 %v1466_v13, 2.0  ;;  %v1294_v18 = vadd.f32 %v1293_v16, %v2631_v62  ;;  %v1597_v16 = vld [vmem:[%s2641_s29 + $0x28] sm:$0xff] }
 0x2a8   : > { %v1532_v19 = vmul.f32 1.442695, %v1498_v17  ;;  %v1467_v47 = vmax.f32 %v1294_v18, -20.0  ;;  %v2643_v20 = vpop.f32.mrb[8].mxu0 }
 0x2a9   : > { %v1299_v24 = vpop.f32.mrb[9].mxu0  ;;  %v1298_v13 = vadd.f32 %v2643_v20, %v2645_v21 }
 0x2aa   : > { %2143 = vpow2.f32 %v1532_v19  ;;  %v1499_v26 = vmin.f32 %v1467_v47, 2.0  ;;  %v1300_v27 = vadd.f32 %v1299_v24, %v2631_v62 }
 0x2ac   : > { %v2140_v28 = vpop.eup %2139  ;;  %v1534_v29 = vmul.f32 1.442695, %v1499_v26  ;;  %v1468_v30 = vmax.f32 %v1300_v27, -20.0  ;;  %v2649_v31 = vpop.f32.mrb[10].mxu0 }
 0x2ad   : > { %v1624_v33 = vmul.f32 %v2140_v28, %v1592_v25  ;;  %v1305_v34 = vpop.f32.mrb[11].mxu0  ;;  %v1304_v20 = vadd.f32 %v2649_v31, %v2645_v21 }
 0x2ae   : > { %2145 = vpow2.f32 %v1534_v29  ;;  %v1500_v36 = vmin.f32 %v1468_v30, 2.0  ;;  %v1306_v37 = vadd.f32 %v1305_v34, %v2631_v62  ;;  %v1598_v30 = vld [vmem:[%s2641_s29 + $0x30] sm:$0xff] }
 0x2af   : > { %v1656_v38 = vadd.f32 %v1624_v33, %v1274_v32 }
 0x2b0   : > { %v2142_v39 = vpop.eup %2141  ;;  %v1536_v40 = vmul.f32 1.442695, %v1500_v36  ;;  %v1469_v41 = vmax.f32 %v1306_v37, -20.0  ;;  %v2654_v42 = vpop.f32.mrb[12].mxu0 }
 0x2b1   : > { %2147 = vtanh.f32 %v1656_v38  ;;  %v1625_v23 = vmul.f32 %v2142_v39, %v1593_v35  ;;  %v1311_v44 = vpop.f32.mrb[13].mxu0  ;;  %v1310_v31 = vadd.f32 %v2654_v42, %v2645_v21 }
 0x2b2   : > { %2149 = vpow2.f32 %v1536_v40  ;;  %v1501_v46 = vmin.f32 %v1469_v41, 2.0  ;;  %v1312_v48 = vadd.f32 %v1311_v44, %v2631_v62 }
 0x2b3   : > { %v1657_v49 = vadd.f32 %v1625_v23, %v1280_v43  ;;  %v1599_v43 = vld [vmem:[%s2641_s29 + $0x38] sm:$0xff] }
 0x2b4   : > { %v2144_v50 = vpop.eup %2143  ;;  %v1538_v51 = vmul.f32 1.442695, %v1501_v46  ;;  %v1470_v52 = vmax.f32 %v1312_v48, -20.0  ;;  %v2659_v53 = vpop.f32.mrb[14].mxu0 }
 0x2b5   : > { %2151 = vtanh.f32 %v1657_v49  ;;  %v1626_v55 = vmul.f32 %v2144_v50, %v1594_v45  ;;  %v1317_v56 = vpop.f32.mrb[15].mxu0  ;;  %v1316_v42 = vadd.f32 %v2659_v53, %v2645_v21 }
 0x2b6   : > { %2153 = vpow2.f32 %v1538_v51  ;;  %v1502_v58 = vmin.f32 %v1470_v52, 2.0  ;;  %v1318_v59 = vadd.f32 %v1317_v56, %v2631_v62 }
 0x2b7   : > { %v1658_v60 = vadd.f32 %v1626_v55, %v1286_v54  ;;  %v1600_v55 = vld [vmem:[%s2641_s29 + $0x40] sm:$0xff] }
 0x2b8   : > { %v2146_v61 = vpop.eup %2145  ;;  %v1540_v63 = vmul.f32 1.442695, %v1502_v58  ;;  %v1471_v0 = vmax.f32 %v1318_v59, -20.0  ;;  %v2664_v1 = vpop.f32.mrb[16].mxu0 }
 0x2b9   : > { %2155 = vtanh.f32 %v1658_v60  ;;  %v1627_v3 = vmul.f32 %v2146_v61, %v1595_v57  ;;  %v1323_v4 = vpop.f32.mrb[17].mxu0  ;;  %v1322_v53 = vadd.f32 %v2664_v1, %v2645_v21 }
 0x2ba   : > { %2157 = vpow2.f32 %v1540_v63  ;;  %v1503_v5 = vmin.f32 %v1471_v0, 2.0  ;;  %v1324_v6 = vadd.f32 %v1323_v4, %v2631_v62  ;;  %v1601_v4 = vld [vmem:[%s2641_s29 + $0x48] sm:$0xff] }
 0x2bb   : > { %v2148_v7 = vpop.eup %2147  ;;  %v1659_v8 = vadd.f32 %v1627_v3, %v1292_v2 }
 0x2bc   : > { %v2150_v9 = vpop.eup %2149  ;;  %1721 = vst.msk [vmem:[%s2670_s10] sm:$0xff] %vm1720_vm2, %v2148_v7  ;;  %v1542_v10 = vmul.f32 1.442695, %v1503_v5  ;;  %v1472_v11 = vmax.f32 %v1324_v6, -20.0  ;;  %v2677_v12 = vpop.f32.mrb[18].mxu0 }
 0x2bd   : > { %2159 = vtanh.f32 %v1659_v8  ;;  %v1628_v14 = vmul.f32 %v2150_v9, %v1596_v22  ;;  %v1329_v15 = vpop.f32.mrb[19].mxu0  ;;  %v1328_v1 = vadd.f32 %v2677_v12, %v2645_v21 }
 0x2be   : > { %2161 = vpow2.f32 %v1542_v10  ;;  %v1504_v17 = vmin.f32 %v1472_v11, 2.0  ;;  %v1330_v18 = vadd.f32 %v1329_v15, %v2631_v62  ;;  %v1602_v15 = vld [vmem:[%s2641_s29 + $0x50] sm:$0xff] }
 0x2bf   : > { %v2152_v19 = vpop.eup %2151  ;;  %v1660_v47 = vadd.f32 %v1628_v14, %v1298_v13 }
 0x2c0   : > { %v2154_v24 = vpop.eup %2153  ;;  %1722 = vst.msk [vmem:[%s2670_s10 + $0x8] sm:$0xff] %vm1720_vm2, %v2152_v19  ;;  %v1544_v25 = vmul.f32 1.442695, %v1504_v17  ;;  %v1473_v26 = vmax.f32 %v1330_v18, -20.0  ;;  %v2685_v27 = vpop.f32.mrb[20].mxu0 }
 0x2c1   : > { %2163 = vtanh.f32 %v1660_v47  ;;  %v1629_v28 = vmul.f32 %v2154_v24, %v1597_v16  ;;  %v1335_v29 = vpop.f32.mrb[21].mxu0  ;;  %v1334_v12 = vadd.f32 %v2685_v27, %v2645_v21 }
 0x2c2   : > { %2165 = vpow2.f32 %v1544_v25  ;;  %v1505_v32 = vmin.f32 %v1473_v26, 2.0  ;;  %v1336_v33 = vadd.f32 %v1335_v29, %v2631_v62  ;;  %v1603_v29 = vld [vmem:[%s2641_s29 + $0x58] sm:$0xff] }
 0x2c3   : > { %v2156_v34 = vpop.eup %2155  ;;  %v1661_v35 = vadd.f32 %v1629_v28, %v1304_v20 }
 0x2c4   : > { %v2158_v36 = vpop.eup %2157  ;;  %1723 = vst.msk [vmem:[%s2670_s10 + $0x10] sm:$0xff] %vm1720_vm2, %v2156_v34  ;;  %v1546_v37 = vmul.f32 1.442695, %v1505_v32  ;;  %v1474_v38 = vmax.f32 %v1336_v33, -20.0  ;;  %v2693_v39 = vpop.f32.mrb[22].mxu0 }
 0x2c5   : > { %2167 = vtanh.f32 %v1661_v35  ;;  %v1630_v40 = vmul.f32 %v2158_v36, %v1598_v30  ;;  %v1341_v41 = vpop.f32.mrb[23].mxu0  ;;  %v1340_v27 = vadd.f32 %v2693_v39, %v2645_v21 }
 0x2c6   : > { %2169 = vpow2.f32 %v1546_v37  ;;  %v1506_v23 = vmin.f32 %v1474_v38, 2.0  ;;  %v1342_v44 = vadd.f32 %v1341_v41, %v2631_v62  ;;  %v1604_v41 = vld [vmem:[%s2641_s29 + $0x60] sm:$0xff] }
 0x2c7   : > { %v2160_v45 = vpop.eup %2159  ;;  %v1662_v46 = vadd.f32 %v1630_v40, %v1310_v31 }
 0x2c8   : > { %v2162_v48 = vpop.eup %2161  ;;  %1724 = vst.msk [vmem:[%s2670_s10 + $0x18] sm:$0xff] %vm1720_vm2, %v2160_v45  ;;  %v1548_v49 = vmul.f32 1.442695, %v1506_v23  ;;  %v1475_v50 = vmax.f32 %v1342_v44, -20.0  ;;  %v2701_v51 = vpop.f32.mrb[24].mxu0 }
 0x2c9   : > { %2171 = vtanh.f32 %v1662_v46  ;;  %v1631_v52 = vmul.f32 %v2162_v48, %v1599_v43  ;;  %v1347_v54 = vpop.f32.mrb[25].mxu0  ;;  %v1346_v39 = vadd.f32 %v2701_v51, %v2645_v21 }
 0x2ca   : > { %2173 = vpow2.f32 %v1548_v49  ;;  %v1507_v56 = vmin.f32 %v1475_v50, 2.0  ;;  %v1348_v57 = vadd.f32 %v1347_v54, %v2631_v62  ;;  %v1605_v54 = vld [vmem:[%s2641_s29 + $0x68] sm:$0xff] }
 0x2cb   : > { %v2164_v58 = vpop.eup %2163  ;;  %v1663_v59 = vadd.f32 %v1631_v52, %v1316_v42 }
 0x2cc   : > { %v2166_v60 = vpop.eup %2165  ;;  %1725 = vst.msk [vmem:[%s2670_s10 + $0x20] sm:$0xff] %vm1720_vm2, %v2164_v58  ;;  %v1550_v61 = vmul.f32 1.442695, %v1507_v56  ;;  %v1476_v63 = vmax.f32 %v1348_v57, -20.0  ;;  %v2709_v0 = vpop.f32.mrb[26].mxu0 }
 0x2cd   : > { %2175 = vtanh.f32 %v1663_v59  ;;  %v1632_v2 = vmul.f32 %v2166_v60, %v1600_v55  ;;  %v1353_v3 = vpop.f32.mrb[27].mxu0  ;;  %v1352_v51 = vadd.f32 %v2709_v0, %v2645_v21 }
 0x2ce   : > { %2177 = vpow2.f32 %v1550_v61  ;;  %v1508_v22 = vmin.f32 %v1476_v63, 2.0  ;;  %v1354_v5 = vadd.f32 %v1353_v3, %v2631_v62  ;;  %v1606_v3 = vld [vmem:[%s2641_s29 + $0x70] sm:$0xff] }
 0x2cf   : > { %v2168_v6 = vpop.eup %2167  ;;  %v1664_v7 = vadd.f32 %v1632_v2, %v1322_v53 }
 0x2d0   : > { %v2170_v8 = vpop.eup %2169  ;;  %1726 = vst.msk [vmem:[%s2670_s10 + $0x28] sm:$0xff] %vm1720_vm2, %v2168_v6  ;;  %v1552_v9 = vmul.f32 1.442695, %v1508_v22  ;;  %v1477_v10 = vmax.f32 %v1354_v5, -20.0  ;;  %v2717_v11 = vpop.f32.mrb[28].mxu0 }
 0x2d1   : > { %2179 = vtanh.f32 %v1664_v7  ;;  %v1633_v13 = vmul.f32 %v2170_v8, %v1601_v4  ;;  %v1359_v14 = vpop.f32.mrb[29].mxu0  ;;  %v1358_v0 = vadd.f32 %v2717_v11, %v2645_v21 }
 0x2d2   : > { %2181 = vpow2.f32 %v1552_v9  ;;  %v1509_v16 = vmin.f32 %v1477_v10, 2.0  ;;  %v1360_v17 = vadd.f32 %v1359_v14, %v2631_v62  ;;  %v1607_v14 = vld [vmem:[%s2641_s29 + $0x78] sm:$0xff] }
 0x2d3   : > { %v2172_v18 = vpop.eup %2171  ;;  %v1665_v19 = vadd.f32 %v1633_v13, %v1328_v1 }
 0x2d4   : > { %v2174_v47 = vpop.eup %2173  ;;  %1727 = vst.msk [vmem:[%s2670_s10 + $0x30] sm:$0xff] %vm1720_vm2, %v2172_v18  ;;  %v1554_v24 = vmul.f32 1.442695, %v1509_v16  ;;  %v1478_v25 = vmax.f32 %v1360_v17, -20.0  ;;  %v2725_v26 = vpop.f32.mrb[30].mxu0 }
 0x2d5   : > { %2183 = vtanh.f32 %v1665_v19  ;;  %v1634_v20 = vmul.f32 %v2174_v47, %v1602_v15  ;;  %v1365_v28 = vpop.f32.mrb[31].mxu0  ;;  %v1364_v11 = vadd.f32 %v2725_v26, %v2645_v21 }
 0x2d6   : > { %2185 = vpow2.f32 %v1554_v24  ;;  %v1510_v30 = vmin.f32 %v1478_v25, 2.0  ;;  %v1366_v32 = vadd.f32 %v1365_v28, %v2631_v62  ;;  %v1608_v28 = vld [vmem:[%s2641_s29 + $0x80] sm:$0xff] }
 0x2d7   : > { %v2176_v33 = vpop.eup %2175  ;;  %v1666_v34 = vadd.f32 %v1634_v20, %v1334_v12 }
 0x2d8   : > { %v2178_v35 = vpop.eup %2177  ;;  %1728 = vst.msk [vmem:[%s2670_s10 + $0x38] sm:$0xff] %vm1720_vm2, %v2176_v33  ;;  %v1556_v36 = vmul.f32 1.442695, %v1510_v30  ;;  %v1479_v37 = vmax.f32 %v1366_v32, -20.0  ;;  %v2733_v38 = vpop.f32.mrb[32].mxu0 }
 0x2d9   : > { %2187 = vtanh.f32 %v1666_v34  ;;  %v1635_v31 = vmul.f32 %v2178_v35, %v1603_v29  ;;  %v1371_v40 = vpop.f32.mrb[33].mxu0  ;;  %v1370_v26 = vadd.f32 %v2733_v38, %v2645_v21 }
 0x2da   : > { %2189 = vpow2.f32 %v1556_v36  ;;  %v1511_v43 = vmin.f32 %v1479_v37, 2.0  ;;  %v1372_v23 = vadd.f32 %v1371_v40, %v2631_v62  ;;  %v1609_v40 = vld [vmem:[%s2641_s29 + $0x88] sm:$0xff] }
 0x2db   : > { %v2180_v44 = vpop.eup %2179  ;;  %v1667_v45 = vadd.f32 %v1635_v31, %v1340_v27 }
 0x2dc   : > { %v2182_v46 = vpop.eup %2181  ;;  %1729 = vst.msk [vmem:[%s2670_s10 + $0x40] sm:$0xff] %vm1720_vm2, %v2180_v44  ;;  %v1558_v48 = vmul.f32 1.442695, %v1511_v43  ;;  %v1480_v49 = vmax.f32 %v1372_v23, -20.0  ;;  %v2741_v50 = vpop.f32.mrb[34].mxu0 }
 0x2dd   : > { %2191 = vtanh.f32 %v1667_v45  ;;  %v1636_v42 = vmul.f32 %v2182_v46, %v1604_v41  ;;  %v1377_v52 = vpop.f32.mrb[35].mxu0  ;;  %v1376_v38 = vadd.f32 %v2741_v50, %v2645_v21 }
 0x2de   : > { %2193 = vpow2.f32 %v1558_v48  ;;  %v1512_v55 = vmin.f32 %v1480_v49, 2.0  ;;  %v1378_v56 = vadd.f32 %v1377_v52, %v2631_v62  ;;  %v1610_v52 = vld [vmem:[%s2641_s29 + $0x90] sm:$0xff] }
 0x2df   : > { %v2184_v57 = vpop.eup %2183  ;;  %v1668_v58 = vadd.f32 %v1636_v42, %v1346_v39 }
 0x2e0   : > { %v2186_v59 = vpop.eup %2185  ;;  %1730 = vst.msk [vmem:[%s2670_s10 + $0x48] sm:$0xff] %vm1720_vm2, %v2184_v57  ;;  %v1560_v60 = vmul.f32 1.442695, %v1512_v55  ;;  %v1481_v61 = vmax.f32 %v1378_v56, -20.0  ;;  %v2749_v63 = vpop.f32.mrb[36].mxu0 }
 0x2e1   : > { %2195 = vtanh.f32 %v1668_v58  ;;  %v1637_v53 = vmul.f32 %v2186_v59, %v1605_v54  ;;  %v1383_v2 = vpop.f32.mrb[37].mxu0  ;;  %v1382_v50 = vadd.f32 %v2749_v63, %v2645_v21 }
 0x2e2   : > { %2197 = vpow2.f32 %v1560_v60  ;;  %v1513_v4 = vmin.f32 %v1481_v61, 2.0  ;;  %v1384_v22 = vadd.f32 %v1383_v2, %v2631_v62  ;;  %v1611_v2 = vld [vmem:[%s2641_s29 + $0x98] sm:$0xff] }
 0x2e3   : > { %v2188_v5 = vpop.eup %2187  ;;  %v1669_v6 = vadd.f32 %v1637_v53, %v1352_v51 }
 0x2e4   : > { %v2190_v7 = vpop.eup %2189  ;;  %1731 = vst.msk [vmem:[%s2670_s10 + $0x50] sm:$0xff] %vm1720_vm2, %v2188_v5  ;;  %v1562_v8 = vmul.f32 1.442695, %v1513_v4  ;;  %v1482_v9 = vmax.f32 %v1384_v22, -20.0  ;;  %v2757_v10 = vpop.f32.mrb[38].mxu0 }
 0x2e5   : > { %2199 = vtanh.f32 %v1669_v6  ;;  %v1638_v1 = vmul.f32 %v2190_v7, %v1606_v3  ;;  %v1389_v13 = vpop.f32.mrb[39].mxu0  ;;  %v1388_v63 = vadd.f32 %v2757_v10, %v2645_v21 }
 0x2e6   : > { %2201 = vpow2.f32 %v1562_v8  ;;  %v1514_v15 = vmin.f32 %v1482_v9, 2.0  ;;  %v1390_v16 = vadd.f32 %v1389_v13, %v2631_v62  ;;  %v1612_v13 = vld [vmem:[%s2641_s29 + $0xa0] sm:$0xff] }
 0x2e7   : > { %v2192_v17 = vpop.eup %2191  ;;  %v1670_v18 = vadd.f32 %v1638_v1, %v1358_v0 }
 0x2e8   : > { %v2194_v19 = vpop.eup %2193  ;;  %1732 = vst.msk [vmem:[%s2670_s10 + $0x58] sm:$0xff] %vm1720_vm2, %v2192_v17  ;;  %v1564_v47 = vmul.f32 1.442695, %v1514_v15  ;;  %v1483_v24 = vmax.f32 %v1390_v16, -20.0  ;;  %v2765_v25 = vpop.f32.mrb[40].mxu0 }
 0x2e9   : > { %2203 = vtanh.f32 %v1670_v18  ;;  %v1639_v12 = vmul.f32 %v2194_v19, %v1607_v14  ;;  %v1395_v20 = vpop.f32.mrb[41].mxu0  ;;  %v1394_v10 = vadd.f32 %v2765_v25, %v2645_v21 }
 0x2ea   : > { %2205 = vpow2.f32 %v1564_v47  ;;  %v1515_v29 = vmin.f32 %v1483_v24, 2.0  ;;  %v1396_v30 = vadd.f32 %v1395_v20, %v2631_v62  ;;  %v1613_v20 = vld [vmem:[%s2641_s29 + $0xa8] sm:$0xff] }
 0x2eb   : > { %v2196_v32 = vpop.eup %2195  ;;  %v1671_v33 = vadd.f32 %v1639_v12, %v1364_v11 }
 0x2ec   : > { %v2198_v34 = vpop.eup %2197  ;;  %1733 = vst.msk [vmem:[%s2670_s10 + $0x60] sm:$0xff] %vm1720_vm2, %v2196_v32  ;;  %v1566_v35 = vmul.f32 1.442695, %v1515_v29  ;;  %v1484_v36 = vmax.f32 %v1396_v30, -20.0  ;;  %v2773_v37 = vpop.f32.mrb[42].mxu0 }
 0x2ed   : > { %2207 = vtanh.f32 %v1671_v33  ;;  %v1640_v27 = vmul.f32 %v2198_v34, %v1608_v28  ;;  %v1401_v31 = vpop.f32.mrb[43].mxu0  ;;  %v1400_v25 = vadd.f32 %v2773_v37, %v2645_v21 }
 0x2ee   : > { %2209 = vpow2.f32 %v1566_v35  ;;  %v1516_v41 = vmin.f32 %v1484_v36, 2.0  ;;  %v1402_v43 = vadd.f32 %v1401_v31, %v2631_v62  ;;  %v1614_v31 = vld [vmem:[%s2641_s29 + $0xb0] sm:$0xff] }
 0x2ef   : > { %v2200_v23 = vpop.eup %2199  ;;  %v1672_v44 = vadd.f32 %v1640_v27, %v1370_v26 }
 0x2f0   : > { %v2202_v45 = vpop.eup %2201  ;;  %1734 = vst.msk [vmem:[%s2670_s10 + $0x68] sm:$0xff] %vm1720_vm2, %v2200_v23  ;;  %v1568_v46 = vmul.f32 1.442695, %v1516_v41  ;;  %v1485_v48 = vmax.f32 %v1402_v43, -20.0  ;;  %v2781_v49 = vpop.f32.mrb[44].mxu0 }
 0x2f1   : > { %2211 = vtanh.f32 %v1672_v44  ;;  %v1641_v39 = vmul.f32 %v2202_v45, %v1609_v40  ;;  %v1407_v42 = vpop.f32.mrb[45].mxu0  ;;  %v1406_v37 = vadd.f32 %v2781_v49, %v2645_v21 }
 0x2f2   : > { %2213 = vpow2.f32 %v1568_v46  ;;  %v1517_v54 = vmin.f32 %v1485_v48, 2.0  ;;  %v1408_v55 = vadd.f32 %v1407_v42, %v2631_v62  ;;  %v1615_v42 = vld [vmem:[%s2641_s29 + $0xb8] sm:$0xff] }
 0x2f3   : > { %v2204_v56 = vpop.eup %2203  ;;  %v1673_v57 = vadd.f32 %v1641_v39, %v1376_v38 }
 0x2f4   : > { %v2206_v58 = vpop.eup %2205  ;;  %1735 = vst.msk [vmem:[%s2670_s10 + $0x70] sm:$0xff] %vm1720_vm2, %v2204_v56  ;;  %v1570_v59 = vmul.f32 1.442695, %v1517_v54  ;;  %v1486_v60 = vmax.f32 %v1408_v55, -20.0  ;;  %v2789_v61 = vpop.f32.mrb[46].mxu0 }
 0x2f5   : > { %2215 = vtanh.f32 %v1673_v57  ;;  %v1642_v51 = vmul.f32 %v2206_v58, %v1610_v52  ;;  %v1413_v53 = vpop.f32.mrb[47].mxu0  ;;  %v1412_v49 = vadd.f32 %v2789_v61, %v2645_v21 }
 0x2f6   : > { %2217 = vpow2.f32 %v1570_v59  ;;  %v1518_v3 = vmin.f32 %v1486_v60, 2.0  ;;  %v1414_v4 = vadd.f32 %v1413_v53, %v2631_v62  ;;  %v1616_v53 = vld [vmem:[%s2641_s29 + $0xc0] sm:$0xff] }
 0x2f7   : > { %v2208_v22 = vpop.eup %2207  ;;  %v1674_v5 = vadd.f32 %v1642_v51, %v1382_v50 }
 0x2f8   : > { %v2210_v6 = vpop.eup %2209  ;;  %1736 = vst.msk [vmem:[%s2670_s10 + $0x78] sm:$0xff] %vm1720_vm2, %v2208_v22  ;;  %v1572_v7 = vmul.f32 1.442695, %v1518_v3  ;;  %v1487_v8 = vmax.f32 %v1414_v4, -20.0  ;;  %v2797_v9 = vpop.f32.mrb[48].mxu0 }
 0x2f9   : > { %2219 = vtanh.f32 %v1674_v5  ;;  %v1643_v0 = vmul.f32 %v2210_v6, %v1611_v2  ;;  %v1419_v1 = vpop.f32.mrb[49].mxu0  ;;  %v1418_v61 = vadd.f32 %v2797_v9, %v2645_v21 }
 0x2fa   : > { %2221 = vpow2.f32 %v1572_v7  ;;  %v1519_v14 = vmin.f32 %v1487_v8, 2.0  ;;  %v1420_v15 = vadd.f32 %v1419_v1, %v2631_v62  ;;  %v1617_v1 = vld [vmem:[%s2641_s29 + $0xc8] sm:$0xff] }
 0x2fb   : > { %v2212_v16 = vpop.eup %2211  ;;  %v1675_v17 = vadd.f32 %v1643_v0, %v1388_v63 }
 0x2fc   : > { %v2214_v18 = vpop.eup %2213  ;;  %1737 = vst.msk [vmem:[%s2670_s10 + $0x80] sm:$0xff] %vm1720_vm2, %v2212_v16  ;;  %v1574_v19 = vmul.f32 1.442695, %v1519_v14  ;;  %v1488_v47 = vmax.f32 %v1420_v15, -20.0  ;;  %v2805_v24 = vpop.f32.mrb[50].mxu0 }
 0x2fd   : > { %2223 = vtanh.f32 %v1675_v17  ;;  %v1644_v11 = vmul.f32 %v2214_v18, %v1612_v13  ;;  %v1425_v12 = vpop.f32.mrb[51].mxu0  ;;  %v1424_v9 = vadd.f32 %v2805_v24, %v2645_v21 }
 0x2fe   : > { %2225 = vpow2.f32 %v1574_v19  ;;  %v1520_v28 = vmin.f32 %v1488_v47, 2.0  ;;  %v1426_v29 = vadd.f32 %v1425_v12, %v2631_v62  ;;  %v1618_v12 = vld [vmem:[%s2641_s29 + $0xd0] sm:$0xff] }
 0x2ff   : > { %v2216_v30 = vpop.eup %2215  ;;  %v1676_v32 = vadd.f32 %v1644_v11, %v1394_v10 }
 0x300   : > { %v2218_v33 = vpop.eup %2217  ;;  %1738 = vst.msk [vmem:[%s2670_s10 + $0x88] sm:$0xff] %vm1720_vm2, %v2216_v30  ;;  %v1576_v34 = vmul.f32 1.442695, %v1520_v28  ;;  %v1489_v35 = vmax.f32 %v1426_v29, -20.0  ;;  %v2813_v36 = vpop.f32.mrb[52].mxu0 }
 0x301   : > { %2227 = vtanh.f32 %v1676_v32  ;;  %v1645_v26 = vmul.f32 %v2218_v33, %v1613_v20  ;;  %v1431_v27 = vpop.f32.mrb[53].mxu0  ;;  %v1430_v24 = vadd.f32 %v2813_v36, %v2645_v21 }
 0x302   : > { %2229 = vpow2.f32 %v1576_v34  ;;  %v1521_v40 = vmin.f32 %v1489_v35, 2.0  ;;  %v1432_v41 = vadd.f32 %v1431_v27, %v2631_v62  ;;  %v1619_v27 = vld [vmem:[%s2641_s29 + $0xd8] sm:$0xff] }
 0x303   : > { %v2220_v43 = vpop.eup %2219  ;;  %v1677_v23 = vadd.f32 %v1645_v26, %v1400_v25 }
 0x304   : > { %v2222_v44 = vpop.eup %2221  ;;  %1739 = vst.msk [vmem:[%s2670_s10 + $0x90] sm:$0xff] %vm1720_vm2, %v2220_v43  ;;  %v1578_v45 = vmul.f32 1.442695, %v1521_v40  ;;  %v1490_v46 = vmax.f32 %v1432_v41, -20.0  ;;  %v2821_v48 = vpop.f32.mrb[54].mxu0 }
 0x305   : > { %2231 = vtanh.f32 %v1677_v23  ;;  %v1646_v38 = vmul.f32 %v2222_v44, %v1614_v31  ;;  %v1437_v39 = vpop.f32.mrb[55].mxu0  ;;  %v1436_v36 = vadd.f32 %v2821_v48, %v2645_v21 }
 0x306   : > { %2233 = vpow2.f32 %v1578_v45  ;;  %v1522_v52 = vmin.f32 %v1490_v46, 2.0  ;;  %v1438_v54 = vadd.f32 %v1437_v39, %v2631_v62 }
 0x307   : > { %v2224_v55 = vpop.eup %2223  ;;  %v1678_v56 = vadd.f32 %v1646_v38, %v1406_v37  ;;  %v1620_v37 = vld [vmem:[%s2641_s29 + $0xe0] sm:$0xff] }
 0x308   : > { %v2226_v57 = vpop.eup %2225  ;;  %1740 = vst.msk [vmem:[%s2670_s10 + $0x98] sm:$0xff] %vm1720_vm2, %v2224_v55  ;;  %v1580_v58 = vmul.f32 1.442695, %v1522_v52  ;;  %v1491_v59 = vmax.f32 %v1438_v54, -20.0  ;;  %v2829_v60 = vpop.f32.mrb[56].mxu0 }
 0x309   : > { %2235 = vtanh.f32 %v1678_v56  ;;  %v1647_v50 = vmul.f32 %v2226_v57, %v1615_v42  ;;  %v1443_v51 = vpop.f32.mrb[57].mxu0  ;;  %v1442_v54 = vadd.f32 %v2829_v60, %v2645_v21  ;;  %v1621_v56 = vld [vmem:[%s2641_s29 + $0xe8] sm:$0xff] }
 0x30a   : > { %2237 = vpow2.f32 %v1580_v58  ;;  %v1523_v2 = vmin.f32 %v1491_v59, 2.0  ;;  %v1444_v3 = vadd.f32 %v1443_v51, %v2631_v62 }
 0x30b   : > { %v2228_v4 = vpop.eup %2227  ;;  %v1679_v22 = vadd.f32 %v1647_v50, %v1412_v49  ;;  %v1622_v50 = vld [vmem:[%s2641_s29 + $0xf0] sm:$0xff] }
 0x30c   : > { %v2230_v5 = vpop.eup %2229  ;;  %1741 = vst.msk [vmem:[%s2670_s10 + $0xa0] sm:$0xff] %vm1720_vm2, %v2228_v4  ;;  %v1582_v6 = vmul.f32 1.442695, %v1523_v2  ;;  %v1492_v7 = vmax.f32 %v1444_v3, -20.0  ;;  %v2837_v8 = vpop.f32.mrb[58].mxu0  ;;  %v1623_v4 = vld [vmem:[%s2641_s29 + $0xf8] sm:$0xff] }
 0x30d   : > { %2239 = vtanh.f32 %v1679_v22  ;;  %v1648_v63 = vmul.f32 %v2230_v5, %v1616_v53  ;;  %v1449_v0 = vpop.f32.mrb[59].mxu0  ;;  %v1448_v59 = vadd.f32 %v2837_v8, %v2645_v21 }
 0x30e   : > { %2241 = vpow2.f32 %v1582_v6  ;;  %v1524_v13 = vmin.f32 %v1492_v7, 2.0  ;;  %v1450_v14 = vadd.f32 %v1449_v0, %v2631_v62 }
 0x30f   : > { %v2232_v15 = vpop.eup %2231  ;;  %v1680_v16 = vadd.f32 %v1648_v63, %v1418_v61 }
 0x310   : > { %v2234_v17 = vpop.eup %2233  ;;  %1742 = vst.msk [vmem:[%s2670_s10 + $0xa8] sm:$0xff] %vm1720_vm2, %v2232_v15  ;;  %v1584_v18 = vmul.f32 1.442695, %v1524_v13  ;;  %v1493_v19 = vmax.f32 %v1450_v14, -20.0  ;;  %v1453_v47 = vpop.f32.mrb[60].mxu0 }
 0x311   : > { %2243 = vtanh.f32 %v1680_v16  ;;  %v1649_v10 = vmul.f32 %v2234_v17, %v1617_v1  ;;  %v1455_v11 = vpop.f32.mrb[61].mxu0  ;;  %v1454_v2 = vadd.f32 %v1453_v47, %v2645_v21 }
 0x312   : > { %2245 = vpow2.f32 %v1584_v18  ;;  %v1525_v20 = vmin.f32 %v1493_v19, 2.0  ;;  %v1456_v28 = vadd.f32 %v1455_v11, %v2631_v62 }
 0x313   : > { %v2236_v29 = vpop.eup %2235  ;;  %v1681_v30 = vadd.f32 %v1649_v10, %v1424_v9 }
 0x314   : > { %v2238_v32 = vpop.eup %2237  ;;  %1743 = vst.msk [vmem:[%s2670_s10 + $0xb0] sm:$0xff] %vm1720_vm2, %v2236_v29  ;;  %v1586_v33 = vmul.f32 1.442695, %v1525_v20  ;;  %v1494_v34 = vmax.f32 %v1456_v28, -20.0  ;;  %v1459_v35 = vpop.f32.mrb[62].mxu0 }
 0x315   : > { %2247 = vtanh.f32 %v1681_v30  ;;  %v1650_v25 = vmul.f32 %v2238_v32, %v1618_v12  ;;  %v1461_v26 = vpop.f32.mrb[63].mxu0  ;;  %v1460_v7 = vadd.f32 %v1459_v35, %v2645_v21 }
 0x316   : > { %2249 = vpow2.f32 %v1586_v33  ;;  %v1526_v31 = vmin.f32 %v1494_v34, 2.0  ;;  %v1462_v40 = vadd.f32 %v1461_v26, %v2631_v62 }
 0x317   : > { %v2240_v41 = vpop.eup %2239  ;;  %v1682_v43 = vadd.f32 %v1650_v25, %v1430_v24 }
 0x318   : > { %v2242_v23 = vpop.eup %2241  ;;  %1744 = vst.msk [vmem:[%s2670_s10 + $0xb8] sm:$0xff] %vm1720_vm2, %v2240_v41  ;;  %v1588_v44 = vmul.f32 1.442695, %v1526_v31  ;;  %v1495_v45 = vmax.f32 %v1462_v40, -20.0 }
 0x319   : > { %2251 = vtanh.f32 %v1682_v43  ;;  %v1651_v46 = vmul.f32 %v2242_v23, %v1619_v27 }
 0x31a   : > { %2253 = vpow2.f32 %v1588_v44  ;;  %v1527_v38 = vmin.f32 %v1495_v45, 2.0 }
 0x31b   : > { %v2244_v39 = vpop.eup %2243  ;;  %v1683_v62 = vadd.f32 %v1651_v46, %v1436_v36 }
 0x31c   : > { %v2246_v42 = vpop.eup %2245  ;;  %1745 = vst.msk [vmem:[%s2670_s10 + $0xc0] sm:$0xff] %vm1720_vm2, %v2244_v39  ;;  %v1590_v52 = vmul.f32 1.442695, %v1527_v38 }
 0x31d   : > { %2255 = vtanh.f32 %v1683_v62  ;;  %v1652_v55 = vmul.f32 %v2246_v42, %v1620_v37 }
 0x31e   : > { %2257 = vpow2.f32 %v1590_v52 }
 0x31f   : > { %v2248_v48 = vpop.eup %2247  ;;  %v1684_v57 = vadd.f32 %v1652_v55, %v1442_v54 }
 0x320   : > { %v2250_v58 = vpop.eup %2249  ;;  %1746 = vst.msk [vmem:[%s2670_s10 + $0xc8] sm:$0xff] %vm1720_vm2, %v2248_v48 }
 0x321   : > { %2259 = vtanh.f32 %v1684_v57  ;;  %v1653_v49 = vmul.f32 %v2250_v58, %v1621_v56 }
 0x323   : > { %v2252_v51 = vpop.eup %2251  ;;  %v1685_v53 = vadd.f32 %v1653_v49, %v1448_v59 }
 0x324   : > { %v2254_v60 = vpop.eup %2253  ;;  %1747 = vst.msk [vmem:[%s2670_s10 + $0xd0] sm:$0xff] %vm1720_vm2, %v2252_v51 }
 0x325   : > { %2261 = vtanh.f32 %v1685_v53  ;;  %v1654_v3 = vmul.f32 %v2254_v60, %v1622_v50 }
 0x327   : > { %v2256_v22 = vpop.eup %2255  ;;  %v1686_v5 = vadd.f32 %v1654_v3, %v1454_v2 }
 0x328   : > { %v2258_v6 = vpop.eup %2257  ;;  %1748 = vst.msk [vmem:[%s2670_s10 + $0xd8] sm:$0xff] %vm1720_vm2, %v2256_v22 }
 0x329   : > { %2263 = vtanh.f32 %v1686_v5  ;;  %v1655_v8 = vmul.f32 %v2258_v6, %v1623_v4 }
 0x32b   : > { %v2260_v61 = vpop.eup %2259  ;;  %v1687_v63 = vadd.f32 %v1655_v8, %v1460_v7 }
 0x32c   : > { %1749 = vst.msk [vmem:[%s2670_s10 + $0xe0] sm:$0xff] %vm1720_vm2, %v2260_v61 }
 0x32d   : > { %2265 = vtanh.f32 %v1687_v63 }
 0x32f   : > { %v2262_v0 = vpop.eup %2261 }
 0x330   : > { %1750 = vst.msk [vmem:[%s2670_s10 + $0xe8] sm:$0xff] %vm1720_vm2, %v2262_v0 }
 0x333   : > { %v2264_v1 = vpop.eup %2263 }
 0x334   : > { %1751 = vst.msk [vmem:[%s2670_s10 + $0xf0] sm:$0xff] %vm1720_vm2, %v2264_v1 }
 0x337   : > { %v2266_v13 = vpop.eup %2265 }
 0x338   : > { %1752 = vst.msk [vmem:[%s2670_s10 + $0xf8] sm:$0xff] %vm1720_vm2, %v2266_v13 }
 0x339 PF: > { %s18_s27 = sadd.s32 1, %s2273_s27  }
 0x33a   : > { %p15_p4 = scmp.ge.s32.totalorder %s18_s27, 4  }
 0x33c   :  { %17 = sbr.rel (!%p15_p4) target bundleno = 1 (0x1), region = 85 }

</bundles_post_ra>
